<compile_context>
chip_gen: v6e
topology: v6e:2x2x1
jax: 0.10.0
libtpu: 0.0.40
codegen_flags: <defaults>
</compile_context>

<pallas_src>
import functools
import math

import jax
import jax.numpy as jnp
from jax import lax
from jax.experimental import pallas as pl
from jax.experimental.pallas import tpu as pltpu

EPS = 1e-6

# Matmul operand dtype for the MXU.  float32 matches the PyTorch reference
# numerics; set to jnp.bfloat16 on v6e/v7x for ~3x MXU throughput (accumulation
# stays float32 via preferred_element_type) after validating tolerance.
MATMUL_DTYPE = jnp.float32


# ---------------------------------------------------------------------------
# Small helpers
# ---------------------------------------------------------------------------
def _mm(a, b):
    return jnp.dot(a.astype(MATMUL_DTYPE), b.astype(MATMUL_DTYPE),
                   preferred_element_type=jnp.float32)


def _mm_nt(a, b):
    """a @ b.T by contracting the last axis of both (no explicit transpose)."""
    return lax.dot_general(a.astype(MATMUL_DTYPE), b.astype(MATMUL_DTYPE),
                           (((1,), (1,)), ((), ())),
                           preferred_element_type=jnp.float32)


def _prenorm(x, alpha, bias):
    """alpha * (x - mean) / (std + eps) + bias, unbiased std (torch default)."""
    d = x.shape[-1]
    mean = jnp.mean(x, axis=-1, keepdims=True)
    xc = x - mean
    var = jnp.sum(xc * xc, axis=-1, keepdims=True) * (1.0 / (d - 1))
    inv = pl.reciprocal(jnp.sqrt(var) + EPS)          # exact recip * mul
    return alpha * (xc * inv) + bias


def _round_up(n, m):
    return ((n + m - 1) // m) * m


def _pick_q_tile(s):
    """Largest query tile (<=256, multiple of 8) dividing s; else the full s."""
    for c in (256, 128, 64, 32, 16, 8):
        if s % c == 0:
            return c
    return s


def _const_spec(shape):
    """Grid-invariant operand (weights / biases): same block every grid step."""
    # TODO(synk): on v7x, single-buffer these blocks via
    # pipeline_mode=pl.Buffered(1) once validated on the target jax build.
    return pl.BlockSpec(shape, lambda *_: (0,) * len(shape))


# ---------------------------------------------------------------------------
# Fused attention sublayer:  out = x + Wo @ Attn( Norm1(x) )
# grid = (batch, q_tiles);  Norm1 + fused QKV projection computed once per
# batch element into VMEM scratch, attention done per q tile with per-head
# contexts accumulated straight into the output projection.
# ---------------------------------------------------------------------------
def _attn_sublayer_kernel(x_ref, n1a_ref, n1b_ref, wqkv_ref, bqkv_ref,
                          wo_ref, bo_ref, o_ref, qkv_scr, *, heads, tq):
    D = x_ref.shape[-1]
    dk = D // heads
    qi = pl.program_id(1)

    # Norm1 + fused (D,3D) QKV projection for the whole sequence, once per
    # batch element.  (Wq/bq are pre-scaled by 1/sqrt(dk) at packing time.)
    @pl.when(qi == 0)
    def _():
        x2 = _prenorm(x_ref[0], n1a_ref[...], n1b_ref[...])
        qkv_scr[...] = _mm(x2, wqkv_ref[...]) + bqkv_ref[...]

    q0 = pl.multiple_of(qi * tq, tq)
    x_tile = x_ref[0, pl.ds(q0, tq), :]                      # residual rows

    # Per-head attention; fold each head's context directly into the output
    # projection -- no concatenate, no (S,D) context temporary.
    acc = jnp.zeros((tq, D), jnp.float32)
    for h in range(heads):
        lo, hi = h * dk, (h + 1) * dk
        qh = qkv_scr[pl.ds(q0, tq), lo:hi]                   # (tq, dk) pre-scaled
        kh = qkv_scr[:, D + lo:D + hi]                       # (S, dk)
        vh = qkv_scr[:, 2 * D + lo:2 * D + hi]               # (S, dk)
        s = _mm_nt(qh, kh)                                   # (tq, S) scores
        s = s - jnp.max(s, axis=-1, keepdims=True)
        p = jnp.exp(s)
        inv_l = pl.reciprocal(jnp.sum(p, axis=-1, keepdims=True))   # exact
        ctx = _mm(p, vh) * inv_l                             # (tq, dk)
        acc = acc + _mm(ctx, wo_ref[lo:hi, :])               # (tq, D)

    # TODO(synk): additive attention mask path not wired in (mask=None eval path).
    o_ref[0] = (x_tile + acc + bo_ref[...]).astype(o_ref.dtype)


def attn_sublayer(x, n1a, n1b, wqkv, bqkv, wo, bo, heads):
    B, S, D = x.shape
    tq = _pick_q_tile(S)
    n_q = S // tq

    flops = B * (8 * S * D * D + 4 * S * S * D)
    bytes_accessed = 4 * (2 * B * S * D + 4 * D * D + 5 * D)
    cost = pl.CostEstimate(flops=flops, transcendentals=B * heads * S * S,
                           bytes_accessed=bytes_accessed)

    kern = functools.partial(_attn_sublayer_kernel, heads=heads, tq=tq)
    return pl.pallas_call(
        kern,
        out_shape=jax.ShapeDtypeStruct((B, S, D), x.dtype),
        grid=(B, n_q),
        in_specs=[
            pl.BlockSpec((1, S, D), lambda b, q: (b, 0, 0)),    # x, one batch elem
            _const_spec((1, D)), _const_spec((1, D)),           # norm1 alpha / bias
            _const_spec((D, 3 * D)), _const_spec((1, 3 * D)),   # fused Wqkv / bqkv
            _const_spec((D, D)), _const_spec((1, D)),           # Wo / bo
        ],
        out_specs=pl.BlockSpec((1, tq, D), lambda b, q: (b, q, 0)),
        scratch_shapes=[pltpu.VMEM((S, 3 * D), jnp.float32)],   # persistent QKV
        compiler_params=pltpu.CompilerParams(
            dimension_semantics=("parallel", "arbitrary")),
        cost_estimate=cost,
    )(x, n1a.reshape(1, D), n1b.reshape(1, D), wqkv, bqkv.reshape(1, 3 * D),
      wo, bo.reshape(1, D))


# ---------------------------------------------------------------------------
# Fused feed-forward sublayer:  out = x + W2 @ relu(W1 @ Norm2(x))
# (row-tiled over B*S; optionally applies the final Encoder norm in-place)
# ---------------------------------------------------------------------------
def _ffn_sublayer_kernel(x_ref, n2a_ref, n2b_ref, w1_ref, b1_ref, w2_ref, b2_ref,
                         fna_ref, fnb_ref, o_ref, *, apply_final_norm):
    x = x_ref[...]                                           # (TM, D)
    x2 = _prenorm(x, n2a_ref[...], n2b_ref[...])
    h = _mm(x2, w1_ref[...]) + b1_ref[...]
    h = jnp.maximum(h, 0.0)                                  # ReLU (ff dropout = id)
    y = x + _mm(h, w2_ref[...]) + b2_ref[...]                # fused residual add
    if apply_final_norm:                                     # fused Encoder.norm
        y = _prenorm(y, fna_ref[...], fnb_ref[...])
    o_ref[...] = y.astype(o_ref.dtype)


def ffn_sublayer(x, n2a, n2b, w1, b1, w2, b2, final_a=None, final_b=None):
    B, S, D = x.shape
    M = B * S
    Dff = w1.shape[1]
    tm = min(256, _round_up(M, 8))
    Mp = _round_up(M, tm)

    xr = x.reshape(M, D)
    if Mp != M:                                    # pad rows; sliced off below
        xr = jnp.pad(xr, ((0, Mp - M), (0, 0)))

    apply_final_norm = final_a is not None
    if not apply_final_norm:                       # dummies (statically unused)
        final_a = jnp.ones((D,), x.dtype)
        final_b = jnp.zeros((D,), x.dtype)

    cost = pl.CostEstimate(flops=4 * Mp * D * Dff, transcendentals=2 * Mp,
                           bytes_accessed=4 * (2 * Mp * D + 2 * D * Dff + Dff + 5 * D))

    kern = functools.partial(_ffn_sublayer_kernel,
                             apply_final_norm=apply_final_norm)
    out = pl.pallas_call(
        kern,
        out_shape=jax.ShapeDtypeStruct((Mp, D), x.dtype),
        grid=(Mp // tm,),
        in_specs=[
            pl.BlockSpec((tm, D), lambda i: (i, 0)),         # activation row tile
            _const_spec((1, D)), _const_spec((1, D)),        # norm2 alpha / bias
            _const_spec((D, Dff)), _const_spec((1, Dff)),    # W1 / b1
            _const_spec((Dff, D)), _const_spec((1, D)),      # W2 / b2
            _const_spec((1, D)), _const_spec((1, D)),        # final norm alpha/bias
        ],
        out_specs=pl.BlockSpec((tm, D), lambda i: (i, 0)),
        compiler_params=pltpu.CompilerParams(dimension_semantics=("parallel",)),
        cost_estimate=cost,
    )(xr, n2a.reshape(1, D), n2b.reshape(1, D), w1, b1.reshape(1, Dff),
      w2, b2.reshape(1, D), final_a.reshape(1, D), final_b.reshape(1, D))
    if Mp != M:
        out = out[:M]
    return out.reshape(B, S, D)


# ---------------------------------------------------------------------------
# Standalone final norm (only used when the encoder has zero layers;
# otherwise it is fused into the last FFN sublayer).
# ---------------------------------------------------------------------------
def _norm_kernel(x_ref, a_ref, b_ref, o_ref):
    o_ref[...] = _prenorm(x_ref[...], a_ref[...], b_ref[...]).astype(o_ref.dtype)


def final_norm(x, alpha, bias):
    B, S, D = x.shape
    M = B * S
    tm = min(256, _round_up(M, 8))
    Mp = _round_up(M, tm)
    xr = x.reshape(M, D)
    if Mp != M:
        xr = jnp.pad(xr, ((0, Mp - M), (0, 0)))
    out = pl.pallas_call(
        _norm_kernel,
        out_shape=jax.ShapeDtypeStruct((Mp, D), x.dtype),
        grid=(Mp // tm,),
        in_specs=[pl.BlockSpec((tm, D), lambda i: (i, 0)),
                  _const_spec((1, D)), _const_spec((1, D))],
        out_specs=pl.BlockSpec((tm, D), lambda i: (i, 0)),
        compiler_params=pltpu.CompilerParams(dimension_semantics=("parallel",)),
        cost_estimate=pl.CostEstimate(flops=4 * Mp * D, transcendentals=Mp,
                                      bytes_accessed=4 * (2 * Mp * D + 2 * D)),
    )(xr, alpha.reshape(1, D), bias.reshape(1, D))
    if Mp != M:
        out = out[:M]
    return out.reshape(B, S, D)


# ---------------------------------------------------------------------------
# Parameter init (deterministic, synthetic).  Q/K/V weights fused to (D, 3D)
# with 1/sqrt(dk) folded into the Wq/bq columns (== scaling the scores).
# ---------------------------------------------------------------------------
def init_encoder_params(key, d_model, N, heads, d_ff):
    dk = d_model // heads
    scale = 1.0 / math.sqrt(dk)

    def lin(key, fan_in, fan_out):
        kw, kb = jax.random.split(key)
        w = jax.random.normal(kw, (fan_in, fan_out), jnp.float32) * 0.02
        b = jax.random.normal(kb, (fan_out,), jnp.float32) * 0.02
        return w, b

    layers = []
    for _ in range(N):
        key, *ks = jax.random.split(key, 7)
        wq, bq = lin(ks[0], d_model, d_model)
        wk, bk = lin(ks[1], d_model, d_model)
        wv, bv = lin(ks[2], d_model, d_model)
        wo, bo = lin(ks[3], d_model, d_model)
        w1, b1 = lin(ks[4], d_model, d_ff)
        w2, b2 = lin(ks[5], d_ff, d_model)
        layers.append(dict(
            n1_a=jnp.ones((d_model,), jnp.float32),
            n1_b=jnp.zeros((d_model,), jnp.float32),
            n2_a=jnp.ones((d_model,), jnp.float32),
            n2_b=jnp.zeros((d_model,), jnp.float32),
            wqkv=jnp.concatenate([wq * scale, wk, wv], axis=1),   # (D, 3D) fused
            bqkv=jnp.concatenate([bq * scale, bk, bv], axis=0),   # (3D,)
            wo=wo, bo=bo, w1=w1, b1=b1, w2=w2, b2=b2,
            raw=dict(wq=wq, bq=bq, wk=wk, bk=bk, wv=wv, bv=bv),   # for reference
        ))
    return dict(layers=layers,
                norm_a=jnp.ones((d_model,), jnp.float32),
                norm_b=jnp.zeros((d_model,), jnp.float32))


# ---------------------------------------------------------------------------
# Encoder forward: 2 fused Pallas kernels per layer (final norm fused into the
# last layer's FFN epilogue).
# ---------------------------------------------------------------------------
def encoder_forward(params, x, heads):
    layers = params["layers"]
    if not layers:
        return final_norm(x, params["norm_a"], params["norm_b"])
    n = len(layers)
    for i, lp in enumerate(layers):
        x = attn_sublayer(x, lp["n1_a"], lp["n1_b"], lp["wqkv"], lp["bqkv"],
                          lp["wo"], lp["bo"], heads)
        last = (i == n - 1)
        x = ffn_sublayer(x, lp["n2_a"], lp["n2_b"], lp["w1"], lp["b1"],
                         lp["w2"], lp["b2"],
                         final_a=params["norm_a"] if last else None,
                         final_b=params["norm_b"] if last else None)
    return x


# ---------------------------------------------------------------------------
# Pure-JAX reference mirroring the PyTorch module (for a correctness check)
# ---------------------------------------------------------------------------
def encoder_reference(params, x, heads):
    def norm(x, a, b):
        mu = jnp.mean(x, axis=-1, keepdims=True)
        xc = x - mu
        var = jnp.sum(xc * xc, axis=-1, keepdims=True) / (x.shape[-1] - 1)
        return a * xc / (jnp.sqrt(var) + EPS) + b

    B, S, D = x.shape
    dk = D // heads
    for lp in params["layers"]:
        r = lp["raw"]
        x2 = norm(x, lp["n1_a"], lp["n1_b"])
        q = (x2 @ r["wq"] + r["bq"]).reshape(B, S, heads, dk).transpose(0, 2, 1, 3)
        k = (x2 @ r["wk"] + r["bk"]).reshape(B, S, heads, dk).transpose(0, 2, 1, 3)
        v = (x2 @ r["wv"] + r["bv"]).reshape(B, S, heads, dk).transpose(0, 2, 1, 3)
        s = jnp.einsum("bhqd,bhkd->bhqk", q, k) / math.sqrt(dk)
        p = jax.nn.softmax(s, axis=-1)
        ctx = jnp.einsum("bhqk,bhkd->bhqd", p, v).transpose(0, 2, 1, 3).reshape(B, S, D)
        x = x + ctx @ lp["wo"] + lp["bo"]
        x2 = norm(x, lp["n2_a"], lp["n2_b"])
        h = jnp.maximum(x2 @ lp["w1"] + lp["b1"], 0.0)
        x = x + h @ lp["w2"] + lp["b2"]
    return norm(x, params["norm_a"], params["norm_b"])


# ---------------------------------------------------------------------------
if __name__ == "__main__":
    # Small shapes consistent with the module's forward: (batch, seq, d_model)
    B, S, D = 2, 8, 32
    N_LAYERS, HEADS = 2, 4
    D_FF = 4 * D

    key = jax.random.PRNGKey(0)
    kx, kp = jax.random.split(key)
    src = jax.random.normal(kx, (B, S, D), jnp.float32)
    params = init_encoder_params(kp, D, N_LAYERS, HEADS, D_FF)

    @jax.jit
    def fwd(p, x):
        return encoder_forward(p, x, HEADS)

    out = jax.block_until_ready(fwd(params, src))
    assert out.shape == (B, S, D)

    ref = encoder_reference(params, src, HEADS)
    err = float(jnp.max(jnp.abs(out - ref)))
    assert err < 1e-3, f"max abs err vs reference: {err}"
    print("KERNEL_OK")
</pallas_src>

<mosaic_0001>
module attributes {stable_mosaic.version = 11 : i64} {
  func.func @_ffn_sublayer_kernel(%arg0: i32, %arg1: memref<16x32xf32, #tpu.memory_space<vmem>>, %arg2: memref<1x32xf32, #tpu.memory_space<vmem>>, %arg3: memref<1x32xf32, #tpu.memory_space<vmem>>, %arg4: memref<32x128xf32, #tpu.memory_space<vmem>>, %arg5: memref<1x128xf32, #tpu.memory_space<vmem>>, %arg6: memref<128x32xf32, #tpu.memory_space<vmem>>, %arg7: memref<1x32xf32, #tpu.memory_space<vmem>>, %arg8: memref<1x32xf32, #tpu.memory_space<vmem>>, %arg9: memref<1x32xf32, #tpu.memory_space<vmem>>, %arg10: memref<16x32xf32, #tpu.memory_space<vmem>>) attributes {dimension_semantics = [#tpu.dimension_semantics<parallel>], iteration_bounds = array<i64: 1>, scalar_prefetch = 0 : i64, scratch_operands = 0 : i64, tpu.core_type = #tpu.core_type<tc>, window_params = [{transform_indices = @transform_0, window_bounds = array<i64: 16, 32>}, {pipeline_mode = #tpu.pipeline_mode<synchronous>, transform_indices = @transform_1, window_bounds = array<i64: 1, 32>}, {pipeline_mode = #tpu.pipeline_mode<synchronous>, transform_indices = @transform_2, window_bounds = array<i64: 1, 32>}, {pipeline_mode = #tpu.pipeline_mode<synchronous>, transform_indices = @transform_3, window_bounds = array<i64: 32, 128>}, {pipeline_mode = #tpu.pipeline_mode<synchronous>, transform_indices = @transform_4, window_bounds = array<i64: 1, 128>}, {pipeline_mode = #tpu.pipeline_mode<synchronous>, transform_indices = @transform_5, window_bounds = array<i64: 128, 32>}, {pipeline_mode = #tpu.pipeline_mode<synchronous>, transform_indices = @transform_6, window_bounds = array<i64: 1, 32>}, {pipeline_mode = #tpu.pipeline_mode<synchronous>, transform_indices = @transform_7, window_bounds = array<i64: 1, 32>}, {pipeline_mode = #tpu.pipeline_mode<synchronous>, transform_indices = @transform_8, window_bounds = array<i64: 1, 32>}, {transform_indices = @transform_9, window_bounds = array<i64: 16, 32>}]} {
    %c0 = arith.constant 0 : index
    %c0_0 = arith.constant 0 : index
    %0 = vector.load %arg1[%c0, %c0_0] : memref<16x32xf32, #tpu.memory_space<vmem>>, vector<16x32xf32>
    %c0_1 = arith.constant 0 : index
    %c0_2 = arith.constant 0 : index
    %1 = vector.load %arg2[%c0_1, %c0_2] : memref<1x32xf32, #tpu.memory_space<vmem>>, vector<1x32xf32>
    %c0_3 = arith.constant 0 : index
    %c0_4 = arith.constant 0 : index
    %2 = vector.load %arg3[%c0_3, %c0_4] : memref<1x32xf32, #tpu.memory_space<vmem>>, vector<1x32xf32>
    %cst = arith.constant dense<0.000000e+00> : vector<16xf32>
    %3 = vector.multi_reduction <add>, %0, %cst [1] : vector<16x32xf32> to vector<16xf32>
    %4 = vector.shape_cast %3 : vector<16xf32> to vector<16x1xf32>
    %cst_5 = arith.constant 3.200000e+01 : f32
    %5 = vector.broadcast %cst_5 : f32 to vector<16x1xf32>
    %6 = arith.divf %4, %5 : vector<16x1xf32>
    %7 = vector.broadcast %6 : vector<16x1xf32> to vector<16x32xf32>
    %8 = arith.subf %0, %7 : vector<16x32xf32>
    %9 = arith.mulf %8, %8 : vector<16x32xf32>
    %cst_6 = arith.constant dense<0.000000e+00> : vector<16xf32>
    %10 = vector.multi_reduction <add>, %9, %cst_6 [1] : vector<16x32xf32> to vector<16xf32>
    %11 = vector.shape_cast %10 : vector<16xf32> to vector<16x1xf32>
    %cst_7 = arith.constant 0.0322580636 : f32
    %12 = vector.broadcast %cst_7 : f32 to vector<16x1xf32>
    %13 = arith.mulf %11, %12 : vector<16x1xf32>
    %14 = math.sqrt %13 : vector<16x1xf32>
    %cst_8 = arith.constant 9.99999997E-7 : f32
    %15 = vector.broadcast %cst_8 : f32 to vector<16x1xf32>
    %16 = arith.addf %14, %15 : vector<16x1xf32>
    %17 = tpu.reciprocal %16 : vector<16x1xf32> -> vector<16x1xf32>
    %18 = vector.broadcast %17 : vector<16x1xf32> to vector<16x32xf32>
    %19 = arith.mulf %8, %18 : vector<16x32xf32>
    %20 = vector.broadcast %1 : vector<1x32xf32> to vector<16x32xf32>
    %21 = arith.mulf %20, %19 : vector<16x32xf32>
    %22 = vector.broadcast %2 : vector<1x32xf32> to vector<16x32xf32>
    %23 = arith.addf %21, %22 : vector<16x32xf32>
    %c0_9 = arith.constant 0 : index
    %c0_10 = arith.constant 0 : index
    %24 = vector.load %arg4[%c0_9, %c0_10] : memref<32x128xf32, #tpu.memory_space<vmem>>, vector<32x128xf32>
    %cst_11 = arith.constant dense<0.000000e+00> : vector<16x128xf32>
    %25 = tpu.matmul %23, %24, %cst_11 {dimension_numbers = #tpu.dot_dimension_numbers<[1], [0], [0], [1], [0, 0, 1, 1], [], []>} : vector<16x32xf32>, vector<32x128xf32>, vector<16x128xf32> -> vector<16x128xf32>
    %c0_12 = arith.constant 0 : index
    %c0_13 = arith.constant 0 : index
    %26 = vector.load %arg5[%c0_12, %c0_13] : memref<1x128xf32, #tpu.memory_space<vmem>>, vector<1x128xf32>
    %27 = vector.broadcast %26 : vector<1x128xf32> to vector<16x128xf32>
    %28 = arith.addf %25, %27 : vector<16x128xf32>
    %cst_14 = arith.constant 0.000000e+00 : f32
    %29 = vector.broadcast %cst_14 : f32 to vector<16x128xf32>
    %30 = arith.maximumf %28, %29 : vector<16x128xf32>
    %c0_15 = arith.constant 0 : index
    %c0_16 = arith.constant 0 : index
    %31 = vector.load %arg6[%c0_15, %c0_16] : memref<128x32xf32, #tpu.memory_space<vmem>>, vector<128x32xf32>
    %cst_17 = arith.constant dense<0.000000e+00> : vector<16x32xf32>
    %32 = tpu.matmul %30, %31, %cst_17 {dimension_numbers = #tpu.dot_dimension_numbers<[1], [0], [0], [1], [0, 0, 1, 1], [], []>} : vector<16x128xf32>, vector<128x32xf32>, vector<16x32xf32> -> vector<16x32xf32>
    %33 = arith.addf %0, %32 : vector<16x32xf32>
    %c0_18 = arith.constant 0 : index
    %c0_19 = arith.constant 0 : index
    %34 = vector.load %arg7[%c0_18, %c0_19] : memref<1x32xf32, #tpu.memory_space<vmem>>, vector<1x32xf32>
    %35 = vector.broadcast %34 : vector<1x32xf32> to vector<16x32xf32>
    %36 = arith.addf %33, %35 : vector<16x32xf32>
    %c0_20 = arith.constant 0 : index
    %c0_21 = arith.constant 0 : index
    %37 = vector.load %arg10[%c0_20, %c0_21] : memref<16x32xf32, #tpu.memory_space<vmem>>, vector<16x32xf32>
    tpu.vector_store %arg10[%c0_20, %c0_21], %36 {strides = array<i32>} : memref<16x32xf32, #tpu.memory_space<vmem>>, vector<16x32xf32>,
    return
  }
  func.func @transform_0(%arg0: i32) -> (i32, i32) {
    %c0_i32 = arith.constant 0 : i32
    %c0_i32_0 = arith.constant 0 : i32
    return %arg0, %c0_i32 : i32, i32
  }
  func.func @transform_1(%arg0: i32) -> (i32, i32) {
    %c0_i32 = arith.constant 0 : i32
    %c0_i32_0 = arith.constant 0 : i32
    %c0_i32_1 = arith.constant 0 : i32
    return %c0_i32, %c0_i32_0 : i32, i32
  }
  func.func @transform_2(%arg0: i32) -> (i32, i32) {
    %c0_i32 = arith.constant 0 : i32
    %c0_i32_0 = arith.constant 0 : i32
    %c0_i32_1 = arith.constant 0 : i32
    return %c0_i32, %c0_i32_0 : i32, i32
  }
  func.func @transform_3(%arg0: i32) -> (i32, i32) {
    %c0_i32 = arith.constant 0 : i32
    %c0_i32_0 = arith.constant 0 : i32
    %c0_i32_1 = arith.constant 0 : i32
    return %c0_i32, %c0_i32_0 : i32, i32
  }
  func.func @transform_4(%arg0: i32) -> (i32, i32) {
    %c0_i32 = arith.constant 0 : i32
    %c0_i32_0 = arith.constant 0 : i32
    %c0_i32_1 = arith.constant 0 : i32
    return %c0_i32, %c0_i32_0 : i32, i32
  }
  func.func @transform_5(%arg0: i32) -> (i32, i32) {
    %c0_i32 = arith.constant 0 : i32
    %c0_i32_0 = arith.constant 0 : i32
    %c0_i32_1 = arith.constant 0 : i32
    return %c0_i32, %c0_i32_0 : i32, i32
  }
  func.func @transform_6(%arg0: i32) -> (i32, i32) {
    %c0_i32 = arith.constant 0 : i32
    %c0_i32_0 = arith.constant 0 : i32
    %c0_i32_1 = arith.constant 0 : i32
    return %c0_i32, %c0_i32_0 : i32, i32
  }
  func.func @transform_7(%arg0: i32) -> (i32, i32) {
    %c0_i32 = arith.constant 0 : i32
    %c0_i32_0 = arith.constant 0 : i32
    %c0_i32_1 = arith.constant 0 : i32
    return %c0_i32, %c0_i32_0 : i32, i32
  }
  func.func @transform_8(%arg0: i32) -> (i32, i32) {
    %c0_i32 = arith.constant 0 : i32
    %c0_i32_0 = arith.constant 0 : i32
    %c0_i32_1 = arith.constant 0 : i32
    return %c0_i32, %c0_i32_0 : i32, i32
  }
  func.func @transform_9(%arg0: i32) -> (i32, i32) {
    %c0_i32 = arith.constant 0 : i32
    %c0_i32_0 = arith.constant 0 : i32
    return %arg0, %c0_i32 : i32, i32
  }
}

module attributes {stable_mosaic.version = 11 : i64} {
  func.func @_attn_sublayer_kernel(%arg0: i32, %arg1: i32, %arg2: memref<1x8x32xf32, #tpu.memory_space<vmem>>, %arg3: memref<1x32xf32, #tpu.memory_space<vmem>>, %arg4: memref<1x32xf32, #tpu.memory_space<vmem>>, %arg5: memref<32x96xf32, #tpu.memory_space<vmem>>, %arg6: memref<1x96xf32, #tpu.memory_space<vmem>>, %arg7: memref<32x32xf32, #tpu.memory_space<vmem>>, %arg8: memref<1x32xf32, #tpu.memory_space<vmem>>, %arg9: memref<1x8x32xf32, #tpu.memory_space<vmem>>, %arg10: memref<8x96xf32, #tpu.memory_space<vmem>>) attributes {dimension_semantics = [#tpu.dimension_semantics<parallel>, #tpu.dimension_semantics<arbitrary>], iteration_bounds = array<i64: 2, 1>, scalar_prefetch = 0 : i64, scratch_operands = 1 : i64, tpu.core_type = #tpu.core_type<tc>, window_params = [{transform_indices = @transform_0, window_bounds = array<i64: 1, 8, 32>}, {pipeline_mode = #tpu.pipeline_mode<synchronous>, transform_indices = @transform_1, window_bounds = array<i64: 1, 32>}, {pipeline_mode = #tpu.pipeline_mode<synchronous>, transform_indices = @transform_2, window_bounds = array<i64: 1, 32>}, {pipeline_mode = #tpu.pipeline_mode<synchronous>, transform_indices = @transform_3, window_bounds = array<i64: 32, 96>}, {pipeline_mode = #tpu.pipeline_mode<synchronous>, transform_indices = @transform_4, window_bounds = array<i64: 1, 96>}, {pipeline_mode = #tpu.pipeline_mode<synchronous>, transform_indices = @transform_5, window_bounds = array<i64: 32, 32>}, {pipeline_mode = #tpu.pipeline_mode<synchronous>, transform_indices = @transform_6, window_bounds = array<i64: 1, 32>}, {transform_indices = @transform_7, window_bounds = array<i64: 1, 8, 32>}]} {
    %c0_i32 = arith.constant 0 : i32
    %0 = arith.cmpi eq, %arg1, %c0_i32 : i32
    %1 = arith.extui %0 : i1 to i32
    %c0_i32_0 = arith.constant 0 : i32
    %2 = arith.cmpi ne, %1, %c0_i32_0 : i32
    scf.if %2 {
      %c0_44 = arith.constant 0 : index
      %c0_45 = arith.constant 0 : index
      %c0_46 = arith.constant 0 : index
      %92 = vector.load %arg2[%c0_44, %c0_45, %c0_46] : memref<1x8x32xf32, #tpu.memory_space<vmem>>, vector<1x8x32xf32>
      %93 = vector.shape_cast %92 : vector<1x8x32xf32> to vector<8x32xf32>
      %c0_47 = arith.constant 0 : index
      %c0_48 = arith.constant 0 : index
      %94 = vector.load %arg3[%c0_47, %c0_48] : memref<1x32xf32, #tpu.memory_space<vmem>>, vector<1x32xf32>
      %c0_49 = arith.constant 0 : index
      %c0_50 = arith.constant 0 : index
      %95 = vector.load %arg4[%c0_49, %c0_50] : memref<1x32xf32, #tpu.memory_space<vmem>>, vector<1x32xf32>
      %cst_51 = arith.constant dense<0.000000e+00> : vector<8xf32>
      %96 = vector.multi_reduction <add>, %93, %cst_51 [1] : vector<8x32xf32> to vector<8xf32>
      %97 = vector.shape_cast %96 : vector<8xf32> to vector<8x1xf32>
      %cst_52 = arith.constant 3.200000e+01 : f32
      %98 = vector.broadcast %cst_52 : f32 to vector<8x1xf32>
      %99 = arith.divf %97, %98 : vector<8x1xf32>
      %100 = vector.broadcast %99 : vector<8x1xf32> to vector<8x32xf32>
      %101 = arith.subf %93, %100 : vector<8x32xf32>
      %102 = arith.mulf %101, %101 : vector<8x32xf32>
      %cst_53 = arith.constant dense<0.000000e+00> : vector<8xf32>
      %103 = vector.multi_reduction <add>, %102, %cst_53 [1] : vector<8x32xf32> to vector<8xf32>
      %104 = vector.shape_cast %103 : vector<8xf32> to vector<8x1xf32>
      %cst_54 = arith.constant 0.0322580636 : f32
      %105 = vector.broadcast %cst_54 : f32 to vector<8x1xf32>
      %106 = arith.mulf %104, %105 : vector<8x1xf32>
      %107 = math.sqrt %106 : vector<8x1xf32>
      %cst_55 = arith.constant 9.99999997E-7 : f32
      %108 = vector.broadcast %cst_55 : f32 to vector<8x1xf32>
      %109 = arith.addf %107, %108 : vector<8x1xf32>
      %110 = tpu.reciprocal %109 : vector<8x1xf32> -> vector<8x1xf32>
      %111 = vector.broadcast %110 : vector<8x1xf32> to vector<8x32xf32>
      %112 = arith.mulf %101, %111 : vector<8x32xf32>
      %113 = vector.broadcast %94 : vector<1x32xf32> to vector<8x32xf32>
      %114 = arith.mulf %113, %112 : vector<8x32xf32>
      %115 = vector.broadcast %95 : vector<1x32xf32> to vector<8x32xf32>
      %116 = arith.addf %114, %115 : vector<8x32xf32>
      %c0_56 = arith.constant 0 : index
      %c0_57 = arith.constant 0 : index
      %117 = vector.load %arg5[%c0_56, %c0_57] : memref<32x96xf32, #tpu.memory_space<vmem>>, vector<32x96xf32>
      %cst_58 = arith.constant dense<0.000000e+00> : vector<8x96xf32>
      %118 = tpu.matmul %116, %117, %cst_58 {dimension_numbers = #tpu.dot_dimension_numbers<[1], [0], [0], [1], [0, 0, 1, 1], [], []>} : vector<8x32xf32>, vector<32x96xf32>, vector<8x96xf32> -> vector<8x96xf32>
      %c0_59 = arith.constant 0 : index
      %c0_60 = arith.constant 0 : index
      %119 = vector.load %arg6[%c0_59, %c0_60] : memref<1x96xf32, #tpu.memory_space<vmem>>, vector<1x96xf32>
      %120 = vector.broadcast %119 : vector<1x96xf32> to vector<8x96xf32>
      %121 = arith.addf %118, %120 : vector<8x96xf32>
      %c0_61 = arith.constant 0 : index
      %c0_62 = arith.constant 0 : index
      %122 = vector.load %arg10[%c0_61, %c0_62] : memref<8x96xf32, #tpu.memory_space<vmem>>, vector<8x96xf32>
      tpu.vector_store %arg10[%c0_61, %c0_62], %121 {strides = array<i32>} : memref<8x96xf32, #tpu.memory_space<vmem>>, vector<8x96xf32>,
    } else {
    }
    %c8_i32 = arith.constant 8 : i32
    %3 = arith.muli %arg1, %c8_i32 : i32
    %4 = tpu.assume_multiple %3, 8 : i32
    %c0 = arith.constant 0 : index
    %5 = arith.index_cast %4 : i32 to index
    %c0_1 = arith.constant 0 : index
    %6 = vector.load %arg2[%c0, %5, %c0_1] : memref<1x8x32xf32, #tpu.memory_space<vmem>>, vector<1x8x32xf32>
    %7 = vector.shape_cast %6 : vector<1x8x32xf32> to vector<8x32xf32>
    %cst = arith.constant 0.000000e+00 : f32
    %8 = vector.broadcast %cst : f32 to vector<8x32xf32>
    %9 = arith.index_cast %4 : i32 to index
    %c0_2 = arith.constant 0 : index
    %10 = vector.load %arg10[%9, %c0_2] : memref<8x96xf32, #tpu.memory_space<vmem>>, vector<8x8xf32>
    %c0_3 = arith.constant 0 : index
    %c32 = arith.constant 32 : index
    %11 = vector.load %arg10[%c0_3, %c32] : memref<8x96xf32, #tpu.memory_space<vmem>>, vector<8x8xf32>
    %c0_4 = arith.constant 0 : index
    %c64 = arith.constant 64 : index
    %12 = vector.load %arg10[%c0_4, %c64] : memref<8x96xf32, #tpu.memory_space<vmem>>, vector<8x8xf32>
    %cst_5 = arith.constant dense<0.000000e+00> : vector<8x8xf32>
    %13 = tpu.matmul %10, %11, %cst_5 {dimension_numbers = #tpu.dot_dimension_numbers<[1], [1], [0], [0], [0, 0, 1, 0], [], []>} : vector<8x8xf32>, vector<8x8xf32>, vector<8x8xf32> -> vector<8x8xf32>
    %cst_6 = arith.constant dense<0xFF800000> : vector<8xf32>
    %14 = vector.multi_reduction <maximumf>, %13, %cst_6 [1] : vector<8x8xf32> to vector<8xf32>
    %15 = vector.shape_cast %14 : vector<8xf32> to vector<8x1xf32>
    %16 = vector.broadcast %15 : vector<8x1xf32> to vector<8x8xf32>
    %17 = arith.subf %13, %16 : vector<8x8xf32>
    %18 = math.exp %17 : vector<8x8xf32>
    %cst_7 = arith.constant dense<0.000000e+00> : vector<8xf32>
    %19 = vector.multi_reduction <add>, %18, %cst_7 [1] : vector<8x8xf32> to vector<8xf32>
    %20 = vector.shape_cast %19 : vector<8xf32> to vector<8x1xf32>
    %21 = tpu.reciprocal %20 : vector<8x1xf32> -> vector<8x1xf32>
    %cst_8 = arith.constant dense<0.000000e+00> : vector<8x8xf32>
    %22 = tpu.matmul %18, %12, %cst_8 {dimension_numbers = #tpu.dot_dimension_numbers<[1], [0], [0], [1], [0, 0, 1, 1], [], []>} : vector<8x8xf32>, vector<8x8xf32>, vector<8x8xf32> -> vector<8x8xf32>
    %23 = vector.broadcast %21 : vector<8x1xf32> to vector<8x8xf32>
    %24 = arith.mulf %22, %23 : vector<8x8xf32>
    %c0_9 = arith.constant 0 : index
    %c0_10 = arith.constant 0 : index
    %25 = vector.load %arg7[%c0_9, %c0_10] : memref<32x32xf32, #tpu.memory_space<vmem>>, vector<8x32xf32>
    %cst_11 = arith.constant dense<0.000000e+00> : vector<8x32xf32>
    %26 = tpu.matmul %24, %25, %cst_11 {dimension_numbers = #tpu.dot_dimension_numbers<[1], [0], [0], [1], [0, 0, 1, 1], [], []>} : vector<8x8xf32>, vector<8x32xf32>, vector<8x32xf32> -> vector<8x32xf32>
    %27 = arith.addf %8, %26 : vector<8x32xf32>
    %28 = arith.index_cast %4 : i32 to index
    %c8 = arith.constant 8 : index
    %29 = vector.load %arg10[%28, %c8] : memref<8x96xf32, #tpu.memory_space<vmem>>, vector<8x8xf32>
    %c0_12 = arith.constant 0 : index
    %c40 = arith.constant 40 : index
    %30 = vector.load %arg10[%c0_12, %c40] : memref<8x96xf32, #tpu.memory_space<vmem>>, vector<8x8xf32>
    %c0_13 = arith.constant 0 : index
    %c72 = arith.constant 72 : index
    %31 = vector.load %arg10[%c0_13, %c72] : memref<8x96xf32, #tpu.memory_space<vmem>>, vector<8x8xf32>
    %cst_14 = arith.constant dense<0.000000e+00> : vector<8x8xf32>
    %32 = tpu.matmul %29, %30, %cst_14 {dimension_numbers = #tpu.dot_dimension_numbers<[1], [1], [0], [0], [0, 0, 1, 0], [], []>} : vector<8x8xf32>, vector<8x8xf32>, vector<8x8xf32> -> vector<8x8xf32>
    %cst_15 = arith.constant dense<0xFF800000> : vector<8xf32>
    %33 = vector.multi_reduction <maximumf>, %32, %cst_15 [1] : vector<8x8xf32> to vector<8xf32>
    %34 = vector.shape_cast %33 : vector<8xf32> to vector<8x1xf32>
    %35 = vector.broadcast %34 : vector<8x1xf32> to vector<8x8xf32>
    %36 = arith.subf %32, %35 : vector<8x8xf32>
    %37 = math.exp %36 : vector<8x8xf32>
    %cst_16 = arith.constant dense<0.000000e+00> : vector<8xf32>
    %38 = vector.multi_reduction <add>, %37, %cst_16 [1] : vector<8x8xf32> to vector<8xf32>
    %39 = vector.shape_cast %38 : vector<8xf32> to vector<8x1xf32>
    %40 = tpu.reciprocal %39 : vector<8x1xf32> -> vector<8x1xf32>
    %cst_17 = arith.constant dense<0.000000e+00> : vector<8x8xf32>
    %41 = tpu.matmul %37, %31, %cst_17 {dimension_numbers = #tpu.dot_dimension_numbers<[1], [0], [0], [1], [0, 0, 1, 1], [], []>} : vector<8x8xf32>, vector<8x8xf32>, vector<8x8xf32> -> vector<8x8xf32>
    %42 = vector.broadcast %40 : vector<8x1xf32> to vector<8x8xf32>
    %43 = arith.mulf %41, %42 : vector<8x8xf32>
    %c8_18 = arith.constant 8 : index
    %c0_19 = arith.constant 0 : index
    %44 = vector.load %arg7[%c8_18, %c0_19] : memref<32x32xf32, #tpu.memory_space<vmem>>, vector<8x32xf32>
    %cst_20 = arith.constant dense<0.000000e+00> : vector<8x32xf32>
    %45 = tpu.matmul %43, %44, %cst_20 {dimension_numbers = #tpu.dot_dimension_numbers<[1], [0], [0], [1], [0, 0, 1, 1], [], []>} : vector<8x8xf32>, vector<8x32xf32>, vector<8x32xf32> -> vector<8x32xf32>
    %46 = arith.addf %27, %45 : vector<8x32xf32>
    %47 = arith.index_cast %4 : i32 to index
    %c16 = arith.constant 16 : index
    %48 = vector.load %arg10[%47, %c16] : memref<8x96xf32, #tpu.memory_space<vmem>>, vector<8x8xf32>
    %c0_21 = arith.constant 0 : index
    %c48 = arith.constant 48 : index
    %49 = vector.load %arg10[%c0_21, %c48] : memref<8x96xf32, #tpu.memory_space<vmem>>, vector<8x8xf32>
    %c0_22 = arith.constant 0 : index
    %c80 = arith.constant 80 : index
    %50 = vector.load %arg10[%c0_22, %c80] : memref<8x96xf32, #tpu.memory_space<vmem>>, vector<8x8xf32>
    %cst_23 = arith.constant dense<0.000000e+00> : vector<8x8xf32>
    %51 = tpu.matmul %48, %49, %cst_23 {dimension_numbers = #tpu.dot_dimension_numbers<[1], [1], [0], [0], [0, 0, 1, 0], [], []>} : vector<8x8xf32>, vector<8x8xf32>, vector<8x8xf32> -> vector<8x8xf32>
    %cst_24 = arith.constant dense<0xFF800000> : vector<8xf32>
    %52 = vector.multi_reduction <maximumf>, %51, %cst_24 [1] : vector<8x8xf32> to vector<8xf32>
    %53 = vector.shape_cast %52 : vector<8xf32> to vector<8x1xf32>
    %54 = vector.broadcast %53 : vector<8x1xf32> to vector<8x8xf32>
    %55 = arith.subf %51, %54 : vector<8x8xf32>
    %56 = math.exp %55 : vector<8x8xf32>
    %cst_25 = arith.constant dense<0.000000e+00> : vector<8xf32>
    %57 = vector.multi_reduction <add>, %56, %cst_25 [1] : vector<8x8xf32> to vector<8xf32>
    %58 = vector.shape_cast %57 : vector<8xf32> to vector<8x1xf32>
    %59 = tpu.reciprocal %58 : vector<8x1xf32> -> vector<8x1xf32>
    %cst_26 = arith.constant dense<0.000000e+00> : vector<8x8xf32>
    %60 = tpu.matmul %56, %50, %cst_26 {dimension_numbers = #tpu.dot_dimension_numbers<[1], [0], [0], [1], [0, 0, 1, 1], [], []>} : vector<8x8xf32>, vector<8x8xf32>, vector<8x8xf32> -> vector<8x8xf32>
    %61 = vector.broadcast %59 : vector<8x1xf32> to vector<8x8xf32>
    %62 = arith.mulf %60, %61 : vector<8x8xf32>
    %c16_27 = arith.constant 16 : index
    %c0_28 = arith.constant 0 : index
    %63 = vector.load %arg7[%c16_27, %c0_28] : memref<32x32xf32, #tpu.memory_space<vmem>>, vector<8x32xf32>
    %cst_29 = arith.constant dense<0.000000e+00> : vector<8x32xf32>
    %64 = tpu.matmul %62, %63, %cst_29 {dimension_numbers = #tpu.dot_dimension_numbers<[1], [0], [0], [1], [0, 0, 1, 1], [], []>} : vector<8x8xf32>, vector<8x32xf32>, vector<8x32xf32> -> vector<8x32xf32>
    %65 = arith.addf %46, %64 : vector<8x32xf32>
    %66 = arith.index_cast %4 : i32 to index
    %c24 = arith.constant 24 : index
    %67 = vector.load %arg10[%66, %c24] : memref<8x96xf32, #tpu.memory_space<vmem>>, vector<8x8xf32>
    %c0_30 = arith.constant 0 : index
    %c56 = arith.constant 56 : index
    %68 = vector.load %arg10[%c0_30, %c56] : memref<8x96xf32, #tpu.memory_space<vmem>>, vector<8x8xf32>
    %c0_31 = arith.constant 0 : index
    %c88 = arith.constant 88 : index
    %69 = vector.load %arg10[%c0_31, %c88] : memref<8x96xf32, #tpu.memory_space<vmem>>, vector<8x8xf32>
    %cst_32 = arith.constant dense<0.000000e+00> : vector<8x8xf32>
    %70 = tpu.matmul %67, %68, %cst_32 {dimension_numbers = #tpu.dot_dimension_numbers<[1], [1], [0], [0], [0, 0, 1, 0], [], []>} : vector<8x8xf32>, vector<8x8xf32>, vector<8x8xf32> -> vector<8x8xf32>
    %cst_33 = arith.constant dense<0xFF800000> : vector<8xf32>
    %71 = vector.multi_reduction <maximumf>, %70, %cst_33 [1] : vector<8x8xf32> to vector<8xf32>
    %72 = vector.shape_cast %71 : vector<8xf32> to vector<8x1xf32>
    %73 = vector.broadcast %72 : vector<8x1xf32> to vector<8x8xf32>
    %74 = arith.subf %70, %73 : vector<8x8xf32>
    %75 = math.exp %74 : vector<8x8xf32>
    %cst_34 = arith.constant dense<0.000000e+00> : vector<8xf32>
    %76 = vector.multi_reduction <add>, %75, %cst_34 [1] : vector<8x8xf32> to vector<8xf32>
    %77 = vector.shape_cast %76 : vector<8xf32> to vector<8x1xf32>
    %78 = tpu.reciprocal %77 : vector<8x1xf32> -> vector<8x1xf32>
    %cst_35 = arith.constant dense<0.000000e+00> : vector<8x8xf32>
    %79 = tpu.matmul %75, %69, %cst_35 {dimension_numbers = #tpu.dot_dimension_numbers<[1], [0], [0], [1], [0, 0, 1, 1], [], []>} : vector<8x8xf32>, vector<8x8xf32>, vector<8x8xf32> -> vector<8x8xf32>
    %80 = vector.broadcast %78 : vector<8x1xf32> to vector<8x8xf32>
    %81 = arith.mulf %79, %80 : vector<8x8xf32>
    %c24_36 = arith.constant 24 : index
    %c0_37 = arith.constant 0 : index
    %82 = vector.load %arg7[%c24_36, %c0_37] : memref<32x32xf32, #tpu.memory_space<vmem>>, vector<8x32xf32>
    %cst_38 = arith.constant dense<0.000000e+00> : vector<8x32xf32>
    %83 = tpu.matmul %81, %82, %cst_38 {dimension_numbers = #tpu.dot_dimension_numbers<[1], [0], [0], [1], [0, 0, 1, 1], [], []>} : vector<8x8xf32>, vector<8x32xf32>, vector<8x32xf32> -> vector<8x32xf32>
    %84 = arith.addf %65, %83 : vector<8x32xf32>
    %85 = arith.addf %7, %84 : vector<8x32xf32>
    %c0_39 = arith.constant 0 : index
    %c0_40 = arith.constant 0 : index
    %86 = vector.load %arg8[%c0_39, %c0_40] : memref<1x32xf32, #tpu.memory_space<vmem>>, vector<1x32xf32>
    %87 = vector.broadcast %86 : vector<1x32xf32> to vector<8x32xf32>
    %88 = arith.addf %85, %87 : vector<8x32xf32>
    %c0_41 = arith.constant 0 : index
    %c0_42 = arith.constant 0 : index
    %c0_43 = arith.constant 0 : index
    %89 = vector.load %arg9[%c0_41, %c0_42, %c0_43] : memref<1x8x32xf32, #tpu.memory_space<vmem>>, vector<1x8x32xf32>
    %90 = vector.shape_cast %89 : vector<1x8x32xf32> to vector<8x32xf32>
    %91 = vector.shape_cast %88 : vector<8x32xf32> to vector<1x8x32xf32>
    tpu.vector_store %arg9[%c0_41, %c0_42, %c0_43], %91 {strides = array<i32>} : memref<1x8x32xf32, #tpu.memory_space<vmem>>, vector<1x8x32xf32>,
    return
  }
  func.func @transform_0(%arg0: i32, %arg1: i32) -> (i32, i32, i32) {
    %c0_i32 = arith.constant 0 : i32
    %c0_i32_0 = arith.constant 0 : i32
    %c0_i32_1 = arith.constant 0 : i32
    return %arg0, %c0_i32, %c0_i32_0 : i32, i32, i32
  }
  func.func @transform_1(%arg0: i32, %arg1: i32) -> (i32, i32) {
    %c0_i32 = arith.constant 0 : i32
    %c0_i32_0 = arith.constant 0 : i32
    %c0_i32_1 = arith.constant 0 : i32
    return %c0_i32, %c0_i32_0 : i32, i32
  }
  func.func @transform_2(%arg0: i32, %arg1: i32) -> (i32, i32) {
    %c0_i32 = arith.constant 0 : i32
    %c0_i32_0 = arith.constant 0 : i32
    %c0_i32_1 = arith.constant 0 : i32
    return %c0_i32, %c0_i32_0 : i32, i32
  }
  func.func @transform_3(%arg0: i32, %arg1: i32) -> (i32, i32) {
    %c0_i32 = arith.constant 0 : i32
    %c0_i32_0 = arith.constant 0 : i32
    %c0_i32_1 = arith.constant 0 : i32
    return %c0_i32, %c0_i32_0 : i32, i32
  }
  func.func @transform_4(%arg0: i32, %arg1: i32) -> (i32, i32) {
    %c0_i32 = arith.constant 0 : i32
    %c0_i32_0 = arith.constant 0 : i32
    %c0_i32_1 = arith.constant 0 : i32
    return %c0_i32, %c0_i32_0 : i32, i32
  }
  func.func @transform_5(%arg0: i32, %arg1: i32) -> (i32, i32) {
    %c0_i32 = arith.constant 0 : i32
    %c0_i32_0 = arith.constant 0 : i32
    %c0_i32_1 = arith.constant 0 : i32
    return %c0_i32, %c0_i32_0 : i32, i32
  }
  func.func @transform_6(%arg0: i32, %arg1: i32) -> (i32, i32) {
    %c0_i32 = arith.constant 0 : i32
    %c0_i32_0 = arith.constant 0 : i32
    %c0_i32_1 = arith.constant 0 : i32
    return %c0_i32, %c0_i32_0 : i32, i32
  }
  func.func @transform_7(%arg0: i32, %arg1: i32) -> (i32, i32, i32) {
    %c0_i32 = arith.constant 0 : i32
    %c0_i32_0 = arith.constant 0 : i32
    return %arg0, %arg1, %c0_i32 : i32, i32, i32
  }
}

module attributes {stable_mosaic.version = 11 : i64} {
  func.func @_ffn_sublayer_kernel(%arg0: i32, %arg1: memref<16x32xf32, #tpu.memory_space<vmem>>, %arg2: memref<1x32xf32, #tpu.memory_space<vmem>>, %arg3: memref<1x32xf32, #tpu.memory_space<vmem>>, %arg4: memref<32x128xf32, #tpu.memory_space<vmem>>, %arg5: memref<1x128xf32, #tpu.memory_space<vmem>>, %arg6: memref<128x32xf32, #tpu.memory_space<vmem>>, %arg7: memref<1x32xf32, #tpu.memory_space<vmem>>, %arg8: memref<1x32xf32, #tpu.memory_space<vmem>>, %arg9: memref<1x32xf32, #tpu.memory_space<vmem>>, %arg10: memref<16x32xf32, #tpu.memory_space<vmem>>) attributes {dimension_semantics = [#tpu.dimension_semantics<parallel>], iteration_bounds = array<i64: 1>, scalar_prefetch = 0 : i64, scratch_operands = 0 : i64, tpu.core_type = #tpu.core_type<tc>, window_params = [{transform_indices = @transform_0, window_bounds = array<i64: 16, 32>}, {pipeline_mode = #tpu.pipeline_mode<synchronous>, transform_indices = @transform_1, window_bounds = array<i64: 1, 32>}, {pipeline_mode = #tpu.pipeline_mode<synchronous>, transform_indices = @transform_2, window_bounds = array<i64: 1, 32>}, {pipeline_mode = #tpu.pipeline_mode<synchronous>, transform_indices = @transform_3, window_bounds = array<i64: 32, 128>}, {pipeline_mode = #tpu.pipeline_mode<synchronous>, transform_indices = @transform_4, window_bounds = array<i64: 1, 128>}, {pipeline_mode = #tpu.pipeline_mode<synchronous>, transform_indices = @transform_5, window_bounds = array<i64: 128, 32>}, {pipeline_mode = #tpu.pipeline_mode<synchronous>, transform_indices = @transform_6, window_bounds = array<i64: 1, 32>}, {pipeline_mode = #tpu.pipeline_mode<synchronous>, transform_indices = @transform_7, window_bounds = array<i64: 1, 32>}, {pipeline_mode = #tpu.pipeline_mode<synchronous>, transform_indices = @transform_8, window_bounds = array<i64: 1, 32>}, {transform_indices = @transform_9, window_bounds = array<i64: 16, 32>}]} {
    %c0 = arith.constant 0 : index
    %c0_0 = arith.constant 0 : index
    %0 = vector.load %arg1[%c0, %c0_0] : memref<16x32xf32, #tpu.memory_space<vmem>>, vector<16x32xf32>
    %c0_1 = arith.constant 0 : index
    %c0_2 = arith.constant 0 : index
    %1 = vector.load %arg2[%c0_1, %c0_2] : memref<1x32xf32, #tpu.memory_space<vmem>>, vector<1x32xf32>
    %c0_3 = arith.constant 0 : index
    %c0_4 = arith.constant 0 : index
    %2 = vector.load %arg3[%c0_3, %c0_4] : memref<1x32xf32, #tpu.memory_space<vmem>>, vector<1x32xf32>
    %cst = arith.constant dense<0.000000e+00> : vector<16xf32>
    %3 = vector.multi_reduction <add>, %0, %cst [1] : vector<16x32xf32> to vector<16xf32>
    %4 = vector.shape_cast %3 : vector<16xf32> to vector<16x1xf32>
    %cst_5 = arith.constant 3.200000e+01 : f32
    %5 = vector.broadcast %cst_5 : f32 to vector<16x1xf32>
    %6 = arith.divf %4, %5 : vector<16x1xf32>
    %7 = vector.broadcast %6 : vector<16x1xf32> to vector<16x32xf32>
    %8 = arith.subf %0, %7 : vector<16x32xf32>
    %9 = arith.mulf %8, %8 : vector<16x32xf32>
    %cst_6 = arith.constant dense<0.000000e+00> : vector<16xf32>
    %10 = vector.multi_reduction <add>, %9, %cst_6 [1] : vector<16x32xf32> to vector<16xf32>
    %11 = vector.shape_cast %10 : vector<16xf32> to vector<16x1xf32>
    %cst_7 = arith.constant 0.0322580636 : f32
    %12 = vector.broadcast %cst_7 : f32 to vector<16x1xf32>
    %13 = arith.mulf %11, %12 : vector<16x1xf32>
    %14 = math.sqrt %13 : vector<16x1xf32>
    %cst_8 = arith.constant 9.99999997E-7 : f32
    %15 = vector.broadcast %cst_8 : f32 to vector<16x1xf32>
    %16 = arith.addf %14, %15 : vector<16x1xf32>
    %17 = tpu.reciprocal %16 : vector<16x1xf32> -> vector<16x1xf32>
    %18 = vector.broadcast %17 : vector<16x1xf32> to vector<16x32xf32>
    %19 = arith.mulf %8, %18 : vector<16x32xf32>
    %20 = vector.broadcast %1 : vector<1x32xf32> to vector<16x32xf32>
    %21 = arith.mulf %20, %19 : vector<16x32xf32>
    %22 = vector.broadcast %2 : vector<1x32xf32> to vector<16x32xf32>
    %23 = arith.addf %21, %22 : vector<16x32xf32>
    %c0_9 = arith.constant 0 : index
    %c0_10 = arith.constant 0 : index
    %24 = vector.load %arg4[%c0_9, %c0_10] : memref<32x128xf32, #tpu.memory_space<vmem>>, vector<32x128xf32>
    %cst_11 = arith.constant dense<0.000000e+00> : vector<16x128xf32>
    %25 = tpu.matmul %23, %24, %cst_11 {dimension_numbers = #tpu.dot_dimension_numbers<[1], [0], [0], [1], [0, 0, 1, 1], [], []>} : vector<16x32xf32>, vector<32x128xf32>, vector<16x128xf32> -> vector<16x128xf32>
    %c0_12 = arith.constant 0 : index
    %c0_13 = arith.constant 0 : index
    %26 = vector.load %arg5[%c0_12, %c0_13] : memref<1x128xf32, #tpu.memory_space<vmem>>, vector<1x128xf32>
    %27 = vector.broadcast %26 : vector<1x128xf32> to vector<16x128xf32>
    %28 = arith.addf %25, %27 : vector<16x128xf32>
    %cst_14 = arith.constant 0.000000e+00 : f32
    %29 = vector.broadcast %cst_14 : f32 to vector<16x128xf32>
    %30 = arith.maximumf %28, %29 : vector<16x128xf32>
    %c0_15 = arith.constant 0 : index
    %c0_16 = arith.constant 0 : index
    %31 = vector.load %arg6[%c0_15, %c0_16] : memref<128x32xf32, #tpu.memory_space<vmem>>, vector<128x32xf32>
    %cst_17 = arith.constant dense<0.000000e+00> : vector<16x32xf32>
    %32 = tpu.matmul %30, %31, %cst_17 {dimension_numbers = #tpu.dot_dimension_numbers<[1], [0], [0], [1], [0, 0, 1, 1], [], []>} : vector<16x128xf32>, vector<128x32xf32>, vector<16x32xf32> -> vector<16x32xf32>
    %33 = arith.addf %0, %32 : vector<16x32xf32>
    %c0_18 = arith.constant 0 : index
    %c0_19 = arith.constant 0 : index
    %34 = vector.load %arg7[%c0_18, %c0_19] : memref<1x32xf32, #tpu.memory_space<vmem>>, vector<1x32xf32>
    %35 = vector.broadcast %34 : vector<1x32xf32> to vector<16x32xf32>
    %36 = arith.addf %33, %35 : vector<16x32xf32>
    %c0_20 = arith.constant 0 : index
    %c0_21 = arith.constant 0 : index
    %37 = vector.load %arg8[%c0_20, %c0_21] : memref<1x32xf32, #tpu.memory_space<vmem>>, vector<1x32xf32>
    %c0_22 = arith.constant 0 : index
    %c0_23 = arith.constant 0 : index
    %38 = vector.load %arg9[%c0_22, %c0_23] : memref<1x32xf32, #tpu.memory_space<vmem>>, vector<1x32xf32>
    %cst_24 = arith.constant dense<0.000000e+00> : vector<16xf32>
    %39 = vector.multi_reduction <add>, %36, %cst_24 [1] : vector<16x32xf32> to vector<16xf32>
    %40 = vector.shape_cast %39 : vector<16xf32> to vector<16x1xf32>
    %cst_25 = arith.constant 3.200000e+01 : f32
    %41 = vector.broadcast %cst_25 : f32 to vector<16x1xf32>
    %42 = arith.divf %40, %41 : vector<16x1xf32>
    %43 = vector.broadcast %42 : vector<16x1xf32> to vector<16x32xf32>
    %44 = arith.subf %36, %43 : vector<16x32xf32>
    %45 = arith.mulf %44, %44 : vector<16x32xf32>
    %cst_26 = arith.constant dense<0.000000e+00> : vector<16xf32>
    %46 = vector.multi_reduction <add>, %45, %cst_26 [1] : vector<16x32xf32> to vector<16xf32>
    %47 = vector.shape_cast %46 : vector<16xf32> to vector<16x1xf32>
    %cst_27 = arith.constant 0.0322580636 : f32
    %48 = vector.broadcast %cst_27 : f32 to vector<16x1xf32>
    %49 = arith.mulf %47, %48 : vector<16x1xf32>
    %50 = math.sqrt %49 : vector<16x1xf32>
    %cst_28 = arith.constant 9.99999997E-7 : f32
    %51 = vector.broadcast %cst_28 : f32 to vector<16x1xf32>
    %52 = arith.addf %50, %51 : vector<16x1xf32>
    %53 = tpu.reciprocal %52 : vector<16x1xf32> -> vector<16x1xf32>
    %54 = vector.broadcast %53 : vector<16x1xf32> to vector<16x32xf32>
    %55 = arith.mulf %44, %54 : vector<16x32xf32>
    %56 = vector.broadcast %37 : vector<1x32xf32> to vector<16x32xf32>
    %57 = arith.mulf %56, %55 : vector<16x32xf32>
    %58 = vector.broadcast %38 : vector<1x32xf32> to vector<16x32xf32>
    %59 = arith.addf %57, %58 : vector<16x32xf32>
    %c0_29 = arith.constant 0 : index
    %c0_30 = arith.constant 0 : index
    %60 = vector.load %arg10[%c0_29, %c0_30] : memref<16x32xf32, #tpu.memory_space<vmem>>, vector<16x32xf32>
    tpu.vector_store %arg10[%c0_29, %c0_30], %59 {strides = array<i32>} : memref<16x32xf32, #tpu.memory_space<vmem>>, vector<16x32xf32>,
    return
  }
  func.func @transform_0(%arg0: i32) -> (i32, i32) {
    %c0_i32 = arith.constant 0 : i32
    %c0_i32_0 = arith.constant 0 : i32
    return %arg0, %c0_i32 : i32, i32
  }
  func.func @transform_1(%arg0: i32) -> (i32, i32) {
    %c0_i32 = arith.constant 0 : i32
    %c0_i32_0 = arith.constant 0 : i32
    %c0_i32_1 = arith.constant 0 : i32
    return %c0_i32, %c0_i32_0 : i32, i32
  }
  func.func @transform_2(%arg0: i32) -> (i32, i32) {
    %c0_i32 = arith.constant 0 : i32
    %c0_i32_0 = arith.constant 0 : i32
    %c0_i32_1 = arith.constant 0 : i32
    return %c0_i32, %c0_i32_0 : i32, i32
  }
  func.func @transform_3(%arg0: i32) -> (i32, i32) {
    %c0_i32 = arith.constant 0 : i32
    %c0_i32_0 = arith.constant 0 : i32
    %c0_i32_1 = arith.constant 0 : i32
    return %c0_i32, %c0_i32_0 : i32, i32
  }
  func.func @transform_4(%arg0: i32) -> (i32, i32) {
    %c0_i32 = arith.constant 0 : i32
    %c0_i32_0 = arith.constant 0 : i32
    %c0_i32_1 = arith.constant 0 : i32
    return %c0_i32, %c0_i32_0 : i32, i32
  }
  func.func @transform_5(%arg0: i32) -> (i32, i32) {
    %c0_i32 = arith.constant 0 : i32
    %c0_i32_0 = arith.constant 0 : i32
    %c0_i32_1 = arith.constant 0 : i32
    return %c0_i32, %c0_i32_0 : i32, i32
  }
  func.func @transform_6(%arg0: i32) -> (i32, i32) {
    %c0_i32 = arith.constant 0 : i32
    %c0_i32_0 = arith.constant 0 : i32
    %c0_i32_1 = arith.constant 0 : i32
    return %c0_i32, %c0_i32_0 : i32, i32
  }
  func.func @transform_7(%arg0: i32) -> (i32, i32) {
    %c0_i32 = arith.constant 0 : i32
    %c0_i32_0 = arith.constant 0 : i32
    %c0_i32_1 = arith.constant 0 : i32
    return %c0_i32, %c0_i32_0 : i32, i32
  }
  func.func @transform_8(%arg0: i32) -> (i32, i32) {
    %c0_i32 = arith.constant 0 : i32
    %c0_i32_0 = arith.constant 0 : i32
    %c0_i32_1 = arith.constant 0 : i32
    return %c0_i32, %c0_i32_0 : i32, i32
  }
  func.func @transform_9(%arg0: i32) -> (i32, i32) {
    %c0_i32 = arith.constant 0 : i32
    %c0_i32_0 = arith.constant 0 : i32
    return %arg0, %c0_i32 : i32, i32
  }
}

module attributes {stable_mosaic.version = 11 : i64} {
  func.func @_attn_sublayer_kernel(%arg0: i32, %arg1: i32, %arg2: memref<1x8x32xf32, #tpu.memory_space<vmem>>, %arg3: memref<1x32xf32, #tpu.memory_space<vmem>>, %arg4: memref<1x32xf32, #tpu.memory_space<vmem>>, %arg5: memref<32x96xf32, #tpu.memory_space<vmem>>, %arg6: memref<1x96xf32, #tpu.memory_space<vmem>>, %arg7: memref<32x32xf32, #tpu.memory_space<vmem>>, %arg8: memref<1x32xf32, #tpu.memory_space<vmem>>, %arg9: memref<1x8x32xf32, #tpu.memory_space<vmem>>, %arg10: memref<8x96xf32, #tpu.memory_space<vmem>>) attributes {dimension_semantics = [#tpu.dimension_semantics<parallel>, #tpu.dimension_semantics<arbitrary>], iteration_bounds = array<i64: 2, 1>, scalar_prefetch = 0 : i64, scratch_operands = 1 : i64, tpu.core_type = #tpu.core_type<tc>, window_params = [{transform_indices = @transform_0, window_bounds = array<i64: 1, 8, 32>}, {pipeline_mode = #tpu.pipeline_mode<synchronous>, transform_indices = @transform_1, window_bounds = array<i64: 1, 32>}, {pipeline_mode = #tpu.pipeline_mode<synchronous>, transform_indices = @transform_2, window_bounds = array<i64: 1, 32>}, {pipeline_mode = #tpu.pipeline_mode<synchronous>, transform_indices = @transform_3, window_bounds = array<i64: 32, 96>}, {pipeline_mode = #tpu.pipeline_mode<synchronous>, transform_indices = @transform_4, window_bounds = array<i64: 1, 96>}, {pipeline_mode = #tpu.pipeline_mode<synchronous>, transform_indices = @transform_5, window_bounds = array<i64: 32, 32>}, {pipeline_mode = #tpu.pipeline_mode<synchronous>, transform_indices = @transform_6, window_bounds = array<i64: 1, 32>}, {transform_indices = @transform_7, window_bounds = array<i64: 1, 8, 32>}]} {
    %c0_i32 = arith.constant 0 : i32
    %0 = arith.cmpi eq, %arg1, %c0_i32 : i32
    %1 = arith.extui %0 : i1 to i32
    %c0_i32_0 = arith.constant 0 : i32
    %2 = arith.cmpi ne, %1, %c0_i32_0 : i32
    scf.if %2 {
      %c0_44 = arith.constant 0 : index
      %c0_45 = arith.constant 0 : index
      %c0_46 = arith.constant 0 : index
      %92 = vector.load %arg2[%c0_44, %c0_45, %c0_46] : memref<1x8x32xf32, #tpu.memory_space<vmem>>, vector<1x8x32xf32>
      %93 = vector.shape_cast %92 : vector<1x8x32xf32> to vector<8x32xf32>
      %c0_47 = arith.constant 0 : index
      %c0_48 = arith.constant 0 : index
      %94 = vector.load %arg3[%c0_47, %c0_48] : memref<1x32xf32, #tpu.memory_space<vmem>>, vector<1x32xf32>
      %c0_49 = arith.constant 0 : index
      %c0_50 = arith.constant 0 : index
      %95 = vector.load %arg4[%c0_49, %c0_50] : memref<1x32xf32, #tpu.memory_space<vmem>>, vector<1x32xf32>
      %cst_51 = arith.constant dense<0.000000e+00> : vector<8xf32>
      %96 = vector.multi_reduction <add>, %93, %cst_51 [1] : vector<8x32xf32> to vector<8xf32>
      %97 = vector.shape_cast %96 : vector<8xf32> to vector<8x1xf32>
      %cst_52 = arith.constant 3.200000e+01 : f32
      %98 = vector.broadcast %cst_52 : f32 to vector<8x1xf32>
      %99 = arith.divf %97, %98 : vector<8x1xf32>
      %100 = vector.broadcast %99 : vector<8x1xf32> to vector<8x32xf32>
      %101 = arith.subf %93, %100 : vector<8x32xf32>
      %102 = arith.mulf %101, %101 : vector<8x32xf32>
      %cst_53 = arith.constant dense<0.000000e+00> : vector<8xf32>
      %103 = vector.multi_reduction <add>, %102, %cst_53 [1] : vector<8x32xf32> to vector<8xf32>
      %104 = vector.shape_cast %103 : vector<8xf32> to vector<8x1xf32>
      %cst_54 = arith.constant 0.0322580636 : f32
      %105 = vector.broadcast %cst_54 : f32 to vector<8x1xf32>
      %106 = arith.mulf %104, %105 : vector<8x1xf32>
      %107 = math.sqrt %106 : vector<8x1xf32>
      %cst_55 = arith.constant 9.99999997E-7 : f32
      %108 = vector.broadcast %cst_55 : f32 to vector<8x1xf32>
      %109 = arith.addf %107, %108 : vector<8x1xf32>
      %110 = tpu.reciprocal %109 : vector<8x1xf32> -> vector<8x1xf32>
      %111 = vector.broadcast %110 : vector<8x1xf32> to vector<8x32xf32>
      %112 = arith.mulf %101, %111 : vector<8x32xf32>
      %113 = vector.broadcast %94 : vector<1x32xf32> to vector<8x32xf32>
      %114 = arith.mulf %113, %112 : vector<8x32xf32>
      %115 = vector.broadcast %95 : vector<1x32xf32> to vector<8x32xf32>
      %116 = arith.addf %114, %115 : vector<8x32xf32>
      %c0_56 = arith.constant 0 : index
      %c0_57 = arith.constant 0 : index
      %117 = vector.load %arg5[%c0_56, %c0_57] : memref<32x96xf32, #tpu.memory_space<vmem>>, vector<32x96xf32>
      %cst_58 = arith.constant dense<0.000000e+00> : vector<8x96xf32>
      %118 = tpu.matmul %116, %117, %cst_58 {dimension_numbers = #tpu.dot_dimension_numbers<[1], [0], [0], [1], [0, 0, 1, 1], [], []>} : vector<8x32xf32>, vector<32x96xf32>, vector<8x96xf32> -> vector<8x96xf32>
      %c0_59 = arith.constant 0 : index
      %c0_60 = arith.constant 0 : index
      %119 = vector.load %arg6[%c0_59, %c0_60] : memref<1x96xf32, #tpu.memory_space<vmem>>, vector<1x96xf32>
      %120 = vector.broadcast %119 : vector<1x96xf32> to vector<8x96xf32>
      %121 = arith.addf %118, %120 : vector<8x96xf32>
      %c0_61 = arith.constant 0 : index
      %c0_62 = arith.constant 0 : index
      %122 = vector.load %arg10[%c0_61, %c0_62] : memref<8x96xf32, #tpu.memory_space<vmem>>, vector<8x96xf32>
      tpu.vector_store %arg10[%c0_61, %c0_62], %121 {strides = array<i32>} : memref<8x96xf32, #tpu.memory_space<vmem>>, vector<8x96xf32>,
    } else {
    }
    %c8_i32 = arith.constant 8 : i32
    %3 = arith.muli %arg1, %c8_i32 : i32
    %4 = tpu.assume_multiple %3, 8 : i32
    %c0 = arith.constant 0 : index
    %5 = arith.index_cast %4 : i32 to index
    %c0_1 = arith.constant 0 : index
    %6 = vector.load %arg2[%c0, %5, %c0_1] : memref<1x8x32xf32, #tpu.memory_space<vmem>>, vector<1x8x32xf32>
    %7 = vector.shape_cast %6 : vector<1x8x32xf32> to vector<8x32xf32>
    %cst = arith.constant 0.000000e+00 : f32
    %8 = vector.broadcast %cst : f32 to vector<8x32xf32>
    %9 = arith.index_cast %4 : i32 to index
    %c0_2 = arith.constant 0 : index
    %10 = vector.load %arg10[%9, %c0_2] : memref<8x96xf32, #tpu.memory_space<vmem>>, vector<8x8xf32>
    %c0_3 = arith.constant 0 : index
    %c32 = arith.constant 32 : index
    %11 = vector.load %arg10[%c0_3, %c32] : memref<8x96xf32, #tpu.memory_space<vmem>>, vector<8x8xf32>
    %c0_4 = arith.constant 0 : index
    %c64 = arith.constant 64 : index
    %12 = vector.load %arg10[%c0_4, %c64] : memref<8x96xf32, #tpu.memory_space<vmem>>, vector<8x8xf32>
    %cst_5 = arith.constant dense<0.000000e+00> : vector<8x8xf32>
    %13 = tpu.matmul %10, %11, %cst_5 {dimension_numbers = #tpu.dot_dimension_numbers<[1], [1], [0], [0], [0, 0, 1, 0], [], []>} : vector<8x8xf32>, vector<8x8xf32>, vector<8x8xf32> -> vector<8x8xf32>
    %cst_6 = arith.constant dense<0xFF800000> : vector<8xf32>
    %14 = vector.multi_reduction <maximumf>, %13, %cst_6 [1] : vector<8x8xf32> to vector<8xf32>
    %15 = vector.shape_cast %14 : vector<8xf32> to vector<8x1xf32>
    %16 = vector.broadcast %15 : vector<8x1xf32> to vector<8x8xf32>
    %17 = arith.subf %13, %16 : vector<8x8xf32>
    %18 = math.exp %17 : vector<8x8xf32>
    %cst_7 = arith.constant dense<0.000000e+00> : vector<8xf32>
    %19 = vector.multi_reduction <add>, %18, %cst_7 [1] : vector<8x8xf32> to vector<8xf32>
    %20 = vector.shape_cast %19 : vector<8xf32> to vector<8x1xf32>
    %21 = tpu.reciprocal %20 : vector<8x1xf32> -> vector<8x1xf32>
    %cst_8 = arith.constant dense<0.000000e+00> : vector<8x8xf32>
    %22 = tpu.matmul %18, %12, %cst_8 {dimension_numbers = #tpu.dot_dimension_numbers<[1], [0], [0], [1], [0, 0, 1, 1], [], []>} : vector<8x8xf32>, vector<8x8xf32>, vector<8x8xf32> -> vector<8x8xf32>
    %23 = vector.broadcast %21 : vector<8x1xf32> to vector<8x8xf32>
    %24 = arith.mulf %22, %23 : vector<8x8xf32>
    %c0_9 = arith.constant 0 : index
    %c0_10 = arith.constant 0 : index
    %25 = vector.load %arg7[%c0_9, %c0_10] : memref<32x32xf32, #tpu.memory_space<vmem>>, vector<8x32xf32>
    %cst_11 = arith.constant dense<0.000000e+00> : vector<8x32xf32>
    %26 = tpu.matmul %24, %25, %cst_11 {dimension_numbers = #tpu.dot_dimension_numbers<[1], [0], [0], [1], [0, 0, 1, 1], [], []>} : vector<8x8xf32>, vector<8x32xf32>, vector<8x32xf32> -> vector<8x32xf32>
    %27 = arith.addf %8, %26 : vector<8x32xf32>
    %28 = arith.index_cast %4 : i32 to index
    %c8 = arith.constant 8 : index
    %29 = vector.load %arg10[%28, %c8] : memref<8x96xf32, #tpu.memory_space<vmem>>, vector<8x8xf32>
    %c0_12 = arith.constant 0 : index
    %c40 = arith.constant 40 : index
    %30 = vector.load %arg10[%c0_12, %c40] : memref<8x96xf32, #tpu.memory_space<vmem>>, vector<8x8xf32>
    %c0_13 = arith.constant 0 : index
    %c72 = arith.constant 72 : index
    %31 = vector.load %arg10[%c0_13, %c72] : memref<8x96xf32, #tpu.memory_space<vmem>>, vector<8x8xf32>
    %cst_14 = arith.constant dense<0.000000e+00> : vector<8x8xf32>
    %32 = tpu.matmul %29, %30, %cst_14 {dimension_numbers = #tpu.dot_dimension_numbers<[1], [1], [0], [0], [0, 0, 1, 0], [], []>} : vector<8x8xf32>, vector<8x8xf32>, vector<8x8xf32> -> vector<8x8xf32>
    %cst_15 = arith.constant dense<0xFF800000> : vector<8xf32>
    %33 = vector.multi_reduction <maximumf>, %32, %cst_15 [1] : vector<8x8xf32> to vector<8xf32>
    %34 = vector.shape_cast %33 : vector<8xf32> to vector<8x1xf32>
    %35 = vector.broadcast %34 : vector<8x1xf32> to vector<8x8xf32>
    %36 = arith.subf %32, %35 : vector<8x8xf32>
    %37 = math.exp %36 : vector<8x8xf32>
    %cst_16 = arith.constant dense<0.000000e+00> : vector<8xf32>
    %38 = vector.multi_reduction <add>, %37, %cst_16 [1] : vector<8x8xf32> to vector<8xf32>
    %39 = vector.shape_cast %38 : vector<8xf32> to vector<8x1xf32>
    %40 = tpu.reciprocal %39 : vector<8x1xf32> -> vector<8x1xf32>
    %cst_17 = arith.constant dense<0.000000e+00> : vector<8x8xf32>
    %41 = tpu.matmul %37, %31, %cst_17 {dimension_numbers = #tpu.dot_dimension_numbers<[1], [0], [0], [1], [0, 0, 1, 1], [], []>} : vector<8x8xf32>, vector<8x8xf32>, vector<8x8xf32> -> vector<8x8xf32>
    %42 = vector.broadcast %40 : vector<8x1xf32> to vector<8x8xf32>
    %43 = arith.mulf %41, %42 : vector<8x8xf32>
    %c8_18 = arith.constant 8 : index
    %c0_19 = arith.constant 0 : index
    %44 = vector.load %arg7[%c8_18, %c0_19] : memref<32x32xf32, #tpu.memory_space<vmem>>, vector<8x32xf32>
    %cst_20 = arith.constant dense<0.000000e+00> : vector<8x32xf32>
    %45 = tpu.matmul %43, %44, %cst_20 {dimension_numbers = #tpu.dot_dimension_numbers<[1], [0], [0], [1], [0, 0, 1, 1], [], []>} : vector<8x8xf32>, vector<8x32xf32>, vector<8x32xf32> -> vector<8x32xf32>
    %46 = arith.addf %27, %45 : vector<8x32xf32>
    %47 = arith.index_cast %4 : i32 to index
    %c16 = arith.constant 16 : index
    %48 = vector.load %arg10[%47, %c16] : memref<8x96xf32, #tpu.memory_space<vmem>>, vector<8x8xf32>
    %c0_21 = arith.constant 0 : index
    %c48 = arith.constant 48 : index
    %49 = vector.load %arg10[%c0_21, %c48] : memref<8x96xf32, #tpu.memory_space<vmem>>, vector<8x8xf32>
    %c0_22 = arith.constant 0 : index
    %c80 = arith.constant 80 : index
    %50 = vector.load %arg10[%c0_22, %c80] : memref<8x96xf32, #tpu.memory_space<vmem>>, vector<8x8xf32>
    %cst_23 = arith.constant dense<0.000000e+00> : vector<8x8xf32>
    %51 = tpu.matmul %48, %49, %cst_23 {dimension_numbers = #tpu.dot_dimension_numbers<[1], [1], [0], [0], [0, 0, 1, 0], [], []>} : vector<8x8xf32>, vector<8x8xf32>, vector<8x8xf32> -> vector<8x8xf32>
    %cst_24 = arith.constant dense<0xFF800000> : vector<8xf32>
    %52 = vector.multi_reduction <maximumf>, %51, %cst_24 [1] : vector<8x8xf32> to vector<8xf32>
    %53 = vector.shape_cast %52 : vector<8xf32> to vector<8x1xf32>
    %54 = vector.broadcast %53 : vector<8x1xf32> to vector<8x8xf32>
    %55 = arith.subf %51, %54 : vector<8x8xf32>
    %56 = math.exp %55 : vector<8x8xf32>
    %cst_25 = arith.constant dense<0.000000e+00> : vector<8xf32>
    %57 = vector.multi_reduction <add>, %56, %cst_25 [1] : vector<8x8xf32> to vector<8xf32>
    %58 = vector.shape_cast %57 : vector<8xf32> to vector<8x1xf32>
    %59 = tpu.reciprocal %58 : vector<8x1xf32> -> vector<8x1xf32>
    %cst_26 = arith.constant dense<0.000000e+00> : vector<8x8xf32>
    %60 = tpu.matmul %56, %50, %cst_26 {dimension_numbers = #tpu.dot_dimension_numbers<[1], [0], [0], [1], [0, 0, 1, 1], [], []>} : vector<8x8xf32>, vector<8x8xf32>, vector<8x8xf32> -> vector<8x8xf32>
    %61 = vector.broadcast %59 : vector<8x1xf32> to vector<8x8xf32>
    %62 = arith.mulf %60, %61 : vector<8x8xf32>
    %c16_27 = arith.constant 16 : index
    %c0_28 = arith.constant 0 : index
    %63 = vector.load %arg7[%c16_27, %c0_28] : memref<32x32xf32, #tpu.memory_space<vmem>>, vector<8x32xf32>
    %cst_29 = arith.constant dense<0.000000e+00> : vector<8x32xf32>
    %64 = tpu.matmul %62, %63, %cst_29 {dimension_numbers = #tpu.dot_dimension_numbers<[1], [0], [0], [1], [0, 0, 1, 1], [], []>} : vector<8x8xf32>, vector<8x32xf32>, vector<8x32xf32> -> vector<8x32xf32>
    %65 = arith.addf %46, %64 : vector<8x32xf32>
    %66 = arith.index_cast %4 : i32 to index
    %c24 = arith.constant 24 : index
    %67 = vector.load %arg10[%66, %c24] : memref<8x96xf32, #tpu.memory_space<vmem>>, vector<8x8xf32>
    %c0_30 = arith.constant 0 : index
    %c56 = arith.constant 56 : index
    %68 = vector.load %arg10[%c0_30, %c56] : memref<8x96xf32, #tpu.memory_space<vmem>>, vector<8x8xf32>
    %c0_31 = arith.constant 0 : index
    %c88 = arith.constant 88 : index
    %69 = vector.load %arg10[%c0_31, %c88] : memref<8x96xf32, #tpu.memory_space<vmem>>, vector<8x8xf32>
    %cst_32 = arith.constant dense<0.000000e+00> : vector<8x8xf32>
    %70 = tpu.matmul %67, %68, %cst_32 {dimension_numbers = #tpu.dot_dimension_numbers<[1], [1], [0], [0], [0, 0, 1, 0], [], []>} : vector<8x8xf32>, vector<8x8xf32>, vector<8x8xf32> -> vector<8x8xf32>
    %cst_33 = arith.constant dense<0xFF800000> : vector<8xf32>
    %71 = vector.multi_reduction <maximumf>, %70, %cst_33 [1] : vector<8x8xf32> to vector<8xf32>
    %72 = vector.shape_cast %71 : vector<8xf32> to vector<8x1xf32>
    %73 = vector.broadcast %72 : vector<8x1xf32> to vector<8x8xf32>
    %74 = arith.subf %70, %73 : vector<8x8xf32>
    %75 = math.exp %74 : vector<8x8xf32>
    %cst_34 = arith.constant dense<0.000000e+00> : vector<8xf32>
    %76 = vector.multi_reduction <add>, %75, %cst_34 [1] : vector<8x8xf32> to vector<8xf32>
    %77 = vector.shape_cast %76 : vector<8xf32> to vector<8x1xf32>
    %78 = tpu.reciprocal %77 : vector<8x1xf32> -> vector<8x1xf32>
    %cst_35 = arith.constant dense<0.000000e+00> : vector<8x8xf32>
    %79 = tpu.matmul %75, %69, %cst_35 {dimension_numbers = #tpu.dot_dimension_numbers<[1], [0], [0], [1], [0, 0, 1, 1], [], []>} : vector<8x8xf32>, vector<8x8xf32>, vector<8x8xf32> -> vector<8x8xf32>
    %80 = vector.broadcast %78 : vector<8x1xf32> to vector<8x8xf32>
    %81 = arith.mulf %79, %80 : vector<8x8xf32>
    %c24_36 = arith.constant 24 : index
    %c0_37 = arith.constant 0 : index
    %82 = vector.load %arg7[%c24_36, %c0_37] : memref<32x32xf32, #tpu.memory_space<vmem>>, vector<8x32xf32>
    %cst_38 = arith.constant dense<0.000000e+00> : vector<8x32xf32>
    %83 = tpu.matmul %81, %82, %cst_38 {dimension_numbers = #tpu.dot_dimension_numbers<[1], [0], [0], [1], [0, 0, 1, 1], [], []>} : vector<8x8xf32>, vector<8x32xf32>, vector<8x32xf32> -> vector<8x32xf32>
    %84 = arith.addf %65, %83 : vector<8x32xf32>
    %85 = arith.addf %7, %84 : vector<8x32xf32>
    %c0_39 = arith.constant 0 : index
    %c0_40 = arith.constant 0 : index
    %86 = vector.load %arg8[%c0_39, %c0_40] : memref<1x32xf32, #tpu.memory_space<vmem>>, vector<1x32xf32>
    %87 = vector.broadcast %86 : vector<1x32xf32> to vector<8x32xf32>
    %88 = arith.addf %85, %87 : vector<8x32xf32>
    %c0_41 = arith.constant 0 : index
    %c0_42 = arith.constant 0 : index
    %c0_43 = arith.constant 0 : index
    %89 = vector.load %arg9[%c0_41, %c0_42, %c0_43] : memref<1x8x32xf32, #tpu.memory_space<vmem>>, vector<1x8x32xf32>
    %90 = vector.shape_cast %89 : vector<1x8x32xf32> to vector<8x32xf32>
    %91 = vector.shape_cast %88 : vector<8x32xf32> to vector<1x8x32xf32>
    tpu.vector_store %arg9[%c0_41, %c0_42, %c0_43], %91 {strides = array<i32>} : memref<1x8x32xf32, #tpu.memory_space<vmem>>, vector<1x8x32xf32>,
    return
  }
  func.func @transform_0(%arg0: i32, %arg1: i32) -> (i32, i32, i32) {
    %c0_i32 = arith.constant 0 : i32
    %c0_i32_0 = arith.constant 0 : i32
    %c0_i32_1 = arith.constant 0 : i32
    return %arg0, %c0_i32, %c0_i32_0 : i32, i32, i32
  }
  func.func @transform_1(%arg0: i32, %arg1: i32) -> (i32, i32) {
    %c0_i32 = arith.constant 0 : i32
    %c0_i32_0 = arith.constant 0 : i32
    %c0_i32_1 = arith.constant 0 : i32
    return %c0_i32, %c0_i32_0 : i32, i32
  }
  func.func @transform_2(%arg0: i32, %arg1: i32) -> (i32, i32) {
    %c0_i32 = arith.constant 0 : i32
    %c0_i32_0 = arith.constant 0 : i32
    %c0_i32_1 = arith.constant 0 : i32
    return %c0_i32, %c0_i32_0 : i32, i32
  }
  func.func @transform_3(%arg0: i32, %arg1: i32) -> (i32, i32) {
    %c0_i32 = arith.constant 0 : i32
    %c0_i32_0 = arith.constant 0 : i32
    %c0_i32_1 = arith.constant 0 : i32
    return %c0_i32, %c0_i32_0 : i32, i32
  }
  func.func @transform_4(%arg0: i32, %arg1: i32) -> (i32, i32) {
    %c0_i32 = arith.constant 0 : i32
    %c0_i32_0 = arith.constant 0 : i32
    %c0_i32_1 = arith.constant 0 : i32
    return %c0_i32, %c0_i32_0 : i32, i32
  }
  func.func @transform_5(%arg0: i32, %arg1: i32) -> (i32, i32) {
    %c0_i32 = arith.constant 0 : i32
    %c0_i32_0 = arith.constant 0 : i32
    %c0_i32_1 = arith.constant 0 : i32
    return %c0_i32, %c0_i32_0 : i32, i32
  }
  func.func @transform_6(%arg0: i32, %arg1: i32) -> (i32, i32) {
    %c0_i32 = arith.constant 0 : i32
    %c0_i32_0 = arith.constant 0 : i32
    %c0_i32_1 = arith.constant 0 : i32
    return %c0_i32, %c0_i32_0 : i32, i32
  }
  func.func @transform_7(%arg0: i32, %arg1: i32) -> (i32, i32, i32) {
    %c0_i32 = arith.constant 0 : i32
    %c0_i32_0 = arith.constant 0 : i32
    return %arg0, %arg1, %c0_i32 : i32, i32, i32
  }
}

</mosaic_0001>

<bundles_post_ra>
// kernel: fwd.5
= control target key start
LH: loop header
LB: loop body
LE: loop exit
PB: predicated region body
PF: predicated region fallthrough
CT: control target
= control target key end

     0   :  { %vm36_vm0 = vcmask 261120   ;;  %s542_s0 = inlined_call_operand.vmem [shape: f32[16,32], index: 0, kind: input, shape index: {}]   ;;  %s543_s7 = inlined_call_operand.vmem [shape: f32[1,32], index: 7, kind: input, shape index: {}]   ;;  %s544_s8 = inlined_call_operand.vmem [shape: f32[1,32], index: 8, kind: input, shape index: {}]   ;;  %s545_s3 = inlined_call_operand.vmem [shape: f32[32,128], index: 3, kind: input, shape index: {}]   ;;  %s546_s5 = inlined_call_operand.vmem [shape: f32[128,32], index: 5, kind: input, shape index: {}]   ;;  %s547_s1 = inlined_call_operand.vmem [shape: f32[1,32], index: 1, kind: input, shape index: {}]   ;;  %s548_s2 = inlined_call_operand.vmem [shape: f32[1,32], index: 2, kind: input, shape index: {}]   ;;  %s549_s4 = inlined_call_operand.vmem [shape: f32[1,128], index: 4, kind: input, shape index: {}]   ;;  %s550_s6 = inlined_call_operand.vmem [shape: f32[1,32], index: 6, kind: input, shape index: {}]   ;;  %s551_s9 = inlined_call_operand.vmem [shape: f32[16,32], index: 9, kind: output, shape index: {}]  }
   0x1   :  { %v433_v0 = vld [vmem:[%s542_s0] sm:$0xff]  ;;  %v438_v1 = vld [vmem:[%s542_s0 + $0x8] sm:$0xff]  ;;  %v97_v14 = vld [vmem:[%s545_s3 + $0x18] sm:$0xff] }
   0x2   :  { %v37_v2 = vsel %vm36_vm0, %v433_v0, 0.0  ;;  %v40_v3 = vsel %vm36_vm0, %v438_v1, 0.0  ;;  %v96_v15 = vld [vmem:[%s545_s3 + $0x10] sm:$0xff]  ;;  %326 = vmatprep.subr.mxu0 %v97_v14  ;;  %v95_v16 = vld [vmem:[%s545_s3 + $0x8] sm:$0xff]  ;;  %v94_v17 = vld [vmem:[%s545_s3] sm:$0xff] }
   0x3   :  { %38 = vadd.xlane.f32.xlu0 %v37_v2  ;;  %327 = vmatpush3.msra.mxu0 %v97_v14  ;;  %v203_v18 = vld [vmem:[%s546_s5 + $0x78] sm:$0xff]  ;;  %v202_v19 = vld [vmem:[%s546_s5 + $0x70] sm:$0xff]  ;;  %v201_v20 = vld [vmem:[%s546_s5 + $0x68] sm:$0xff] }
   0x4   :  { %328 = vmatprep.subr.mxu0 %v96_v15  ;;  %337 = vmatprep.subr.mxu1 %v203_v18  ;;  %v200_v21 = vld [vmem:[%s546_s5 + $0x60] sm:$0xff]  ;;  %v199_v22 = vld [vmem:[%s546_s5 + $0x58] sm:$0xff]  ;;  %v198_v23 = vld [vmem:[%s546_s5 + $0x50] sm:$0xff] }
   0x5   :  { %329 = vmatpush3.msra.mxu0 %v96_v15  ;;  %338 = vmatpush3.msra.mxu1 %v203_v18  ;;  %v197_v24 = vld [vmem:[%s546_s5 + $0x48] sm:$0xff]  ;;  %v196_v25 = vld [vmem:[%s546_s5 + $0x40] sm:$0xff]  ;;  %v195_v26 = vld [vmem:[%s546_s5 + $0x38] sm:$0xff] }
   0x6   :  { %330 = vmatprep.subr.mxu0 %v95_v16  ;;  %339 = vmatprep.subr.mxu1 %v202_v19  ;;  %v194_v27 = vld [vmem:[%s546_s5 + $0x30] sm:$0xff]  ;;  %v193_v28 = vld [vmem:[%s546_s5 + $0x28] sm:$0xff]  ;;  %v192_v29 = vld [vmem:[%s546_s5 + $0x20] sm:$0xff] }
   0x7   :  { %41 = vadd.xlane.f32.xlu0 %v40_v3  ;;  %331 = vmatpush3.msra.mxu0 %v95_v16  ;;  %v296_v47 = vld [vmem:[%s547_s1] ss:$0 sm:$0xff]  ;;  %v191_v56 = vld [vmem:[%s546_s5 + $0x18] sm:$0xff]  ;;  %v190_v57 = vld [vmem:[%s546_s5 + $0x10] sm:$0xff] }
   0x8   :  { %332 = vmatprep.subr.mxu0 %v94_v17  ;;  %340 = vmatpush3.msra.mxu1 %v202_v19  ;;  %v297_v49 = vld [vmem:[%s548_s2] ss:$0 sm:$0xff]  ;;  %v189_v58 = vld [vmem:[%s546_s5 + $0x8] sm:$0xff] }
   0x9   :  { %333 = vmatpush3.msra.mxu0 %v94_v17  ;;  %341 = vmatprep.subr.mxu1 %v201_v20  ;;  %v188_v59 = vld [vmem:[%s546_s5] sm:$0xff] }
   0xa   :  { %342 = vmatpush3.msra.mxu1 %v201_v20  ;;  %v298_v60 = vld [vmem:[%s549_s4] ss:$0 sm:$0xff] }
   0xb   :  { %343 = vmatprep.subr.mxu1 %v200_v21 }
   0xc   :  { %344 = vmatpush3.msra.mxu1 %v200_v21 }
   0xd   :  { %345 = vmatprep.subr.mxu1 %v199_v22 }
   0xe   :  { %346 = vmatpush3.msra.mxu1 %v199_v22 }
   0xf   :  { %347 = vmatprep.subr.mxu1 %v198_v23 }
  0x10   :  { %348 = vmatpush3.msra.mxu1 %v198_v23 }
  0x11   :  { %349 = vmatprep.subr.mxu1 %v197_v24 }
  0x12   :  { %350 = vmatpush3.msra.mxu1 %v197_v24 }
  0x13   :  { %351 = vmatprep.subr.mxu1 %v196_v25 }
  0x14   :  { %352 = vmatpush3.msra.mxu1 %v196_v25 }
  0x15   :  { %353 = vmatprep.subr.mxu1 %v195_v26 }
  0x16   :  { %354 = vmatpush3.msra.mxu1 %v195_v26 }
  0x17   :  { %355 = vmatprep.subr.mxu1 %v194_v27 }
  0x18   :  { %356 = vmatpush3.msra.mxu1 %v194_v27 }
  0x19   :  { %357 = vmatprep.subr.mxu1 %v193_v28 }
  0x1a   :  { %358 = vmatpush3.msra.mxu1 %v193_v28 }
  0x1b   :  { %359 = vmatprep.subr.mxu1 %v192_v29 }
  0x1c   :  { %360 = vmatpush3.msra.mxu1 %v192_v29 }
  0x1d   :  { %361 = vmatprep.subr.mxu1 %v191_v56 }
  0x1e   :  { %362 = vmatpush3.msra.mxu1 %v191_v56 }
  0x1f   :  { %363 = vmatprep.subr.mxu1 %v190_v57 }
  0x20   :  { %364 = vmatpush3.msra.mxu1 %v190_v57 }
  0x21   :  { %365 = vmatprep.subr.mxu1 %v189_v58 }
  0x22   :  { %366 = vmatpush3.msra.mxu1 %v189_v58 }
  0x23   :  { %367 = vmatprep.subr.mxu1 %v188_v59 }
  0x24   :  { %368 = vmatpush3.msra.mxu1 %v188_v59 }
  0x8c   :  { %v39_v4 = vpop.xlane.xlu0 %38 }
  0x8d   :  { %v44_v5 = vmul.f32 0.03125, %v39_v4 }
  0x8f   :  { %v445_v6 = vsub.f32 %v433_v0, %v44_v5 }
  0x90   :  { %v42_v7 = vpop.xlane.xlu0 %41 }
  0x91   :  { %v45_v8 = vmul.f32 0.03125, %v42_v7  ;;  %v48_v9 = vmul.f32 %v445_v6, %v445_v6 }
  0x93   :  { %v450_v10 = vsub.f32 %v438_v1, %v45_v8  ;;  %v50_v11 = vsel %vm36_vm0, %v48_v9, 0.0 }
  0x94   :  { %51 = vadd.xlane.f32.xlu1 %v50_v11 }
  0x95   :  { %v49_v12 = vmul.f32 %v450_v10, %v450_v10 }
  0x97   :  { %v53_v13 = vsel %vm36_vm0, %v49_v12, 0.0 }
  0x98   :  { %54 = vadd.xlane.f32.xlu1 %v53_v13 }
 0x11d   :  { %v52_v30 = vpop.xlane.xlu1 %51 }
 0x11e   :  { %v56_v31 = vmul.f32 0.032258064, %v52_v30 }
 0x120   :  { %372 = vrsqrt.f32 %v56_v31  ;;  %vm60_vm1 = vcmp.eq.f32.partialorder %v56_v31, inf  ;;  %v63_v36 = vand.u32 2147483648, %v56_v31  ;;  %vm62_vm2 = vcmp.eq.f32.partialorder %v56_v31, 0.0 }
 0x121   :  { %v55_v32 = vpop.xlane.xlu1 %54 }
 0x122   :  { %v57_v33 = vmul.f32 0.032258064, %v55_v32 }
 0x124   :  { %374 = vrsqrt.f32 %v57_v33  ;;  %vm67_vm3 = vcmp.eq.f32.partialorder %v57_v33, inf  ;;  %v70_v42 = vand.u32 2147483648, %v57_v33  ;;  %vm69_vm4 = vcmp.eq.f32.partialorder %v57_v33, 0.0 }
 0x12d   :  { %v373_v34 = vpop.eup %372 }
 0x12e   :  { %v59_v35 = vmul.f32 %v373_v34, %v56_v31 }
 0x130   :  { %v61_v37 = vsel %vm60_vm1, %v56_v31, %v59_v35 }
 0x131   :  { %v375_v38 = vpop.eup %374  ;;  %v64_v39 = vsel %vm62_vm2, %v63_v36, %v61_v37 }
 0x132   :  { %v66_v40 = vmul.f32 %v375_v38, %v57_v33  ;;  %v72_v41 = vadd.f32 1e-06, %v64_v39 }
 0x134   :  { %v68_v43 = vsel %vm67_vm3, %v57_v33, %v66_v40  ;;  %376 = vrcp.f32 %v72_v41 }
 0x135   :  { %v71_v44 = vsel %vm69_vm4, %v70_v42, %v68_v43 }
 0x136   :  { %v73_v45 = vadd.f32 1e-06, %v71_v44 }
 0x138   :  { %378 = vrcp.f32 %v73_v45 }
 0x141   :  { %v377_v46 = vpop.eup %376 }
 0x142   :  { %v76_v48 = vmul.f32 %v377_v46, %v445_v6  ;;  %v301_v6 = vld [vmem:[%s550_s6] ss:$0 sm:$0xff] }
 0x144   :  { %v84_v50 = vmul.f32 %v296_v47, %v76_v48 }
 0x145   :  { %v379_v51 = vpop.eup %378 }
 0x146   :  { %v77_v52 = vmul.f32 %v379_v51, %v450_v10  ;;  %v92_v53 = vadd.f32 %v297_v49, %v84_v50 }
 0x148   :  { %v85_v54 = vmul.f32 %v296_v47, %v77_v52  ;;  %334 = vmatprep.mubr.msk.f32.mxu0 %vm36_vm0, %v92_v53 }
 0x14a   :  { %v93_v55 = vadd.f32 %v297_v49, %v85_v54 }
 0x14c   :  { %335 = vmatmul.mubr.msk.f32.vlgmr.msra.gmra.mxu0 %vm36_vm0, %v93_v55 }
 0x20c   :  { %v336_v61 = vpop.f32.mrf.mxu0 }
 0x20d   :  { %v183_v62 = vadd.f32 %v336_v61, %v298_v60 }
 0x20e   :  { %v177_v63 = vpop.f32.mrf.mxu0 }
 0x20f   :  { %v178_v2 = vadd.f32 %v298_v60, %v177_v63  ;;  %v187_v4 = vmax.f32 %v183_v62, 0.0 }
 0x211   :  { %v186_v3 = vmax.f32 %v178_v2, 0.0 }
 0x213   :  { %369 = vmatprep.mubr.f32.mxu1 %v186_v3 }
 0x214   :  { %370 = vmatmul.mubr.f32.vlgmr.msra.gmra.mxu1 %v187_v4 }
 0x2d4   :  { %v371_v5 = vpop.f32.mrf.mxu1 }
 0x2d5   :  { %v280_v7 = vadd.f32 %v371_v5, %v438_v1 }
 0x2d6   :  { %v270_v8 = vpop.f32.mrf.mxu1 }
 0x2d7   :  { %v289_v9 = vadd.f32 %v301_v6, %v280_v7  ;;  %v279_v10 = vadd.f32 %v270_v8, %v433_v0 }
 0x2d9   :  { %291 = vst.msk [vmem:[%s551_s9 + $0x8] sm:$0xff] %vm36_vm0, %v289_v9  ;;  %v288_v11 = vadd.f32 %v301_v6, %v279_v10 }
 0x2db   :  { %290 = vst.msk [vmem:[%s551_s9] sm:$0xff] %vm36_vm0, %v288_v11 }

// kernel: fwd.7
= control target key start
LH: loop header
LB: loop body
LE: loop exit
PB: predicated region body
PF: predicated region fallthrough
CT: control target
= control target key end

     0   :  { %vm37_vm0 = vcmask 261120   ;;  %s658_s0 = inlined_call_operand.vmem [shape: f32[16,32], index: 0, kind: input, shape index: {}]   ;;  %s659_s1 = inlined_call_operand.vmem [shape: f32[1,32], index: 1, kind: input, shape index: {}]   ;;  %s660_s2 = inlined_call_operand.vmem [shape: f32[1,32], index: 2, kind: input, shape index: {}]   ;;  %s661_s3 = inlined_call_operand.vmem [shape: f32[32,128], index: 3, kind: input, shape index: {}]   ;;  %s662_s4 = inlined_call_operand.vmem [shape: f32[1,128], index: 4, kind: input, shape index: {}]   ;;  %s663_s5 = inlined_call_operand.vmem [shape: f32[128,32], index: 5, kind: input, shape index: {}]   ;;  %s664_s6 = inlined_call_operand.vmem [shape: f32[1,32], index: 6, kind: input, shape index: {}]   ;;  %s665_s7 = inlined_call_operand.vmem [shape: f32[1,32], index: 7, kind: input, shape index: {}]   ;;  %s666_s8 = inlined_call_operand.vmem [shape: f32[1,32], index: 8, kind: input, shape index: {}]   ;;  %s667_s9 = inlined_call_operand.hbm [shape: f32[16,32], index: 9, kind: output, shape index: {}]  }
   0x1   :  { %v542_v0 = vld [vmem:[%s658_s0] sm:$0xff]  ;;  %v547_v1 = vld [vmem:[%s658_s0 + $0x8] sm:$0xff] }
   0x2   :  { %14 = vsyncpa [#allocation3], 0  ;;  %v38_v2 = vsel %vm37_vm0, %v542_v0, 0.0  ;;  %v41_v3 = vsel %vm37_vm0, %v547_v1, 0.0  ;;  %v98_v14 = vld [vmem:[%s661_s3 + $0x18] sm:$0xff]  ;;  %v97_v15 = vld [vmem:[%s661_s3 + $0x10] sm:$0xff] }
   0x3   :  { %39 = vadd.xlane.f32.xlu0 %v38_v2  ;;  %399 = vmatprep.subr.mxu0 %v98_v14  ;;  %v96_v16 = vld [vmem:[%s661_s3 + $0x8] sm:$0xff]  ;;  %v95_v17 = vld [vmem:[%s661_s3] sm:$0xff]  ;;  %v204_v18 = vld [vmem:[%s663_s5 + $0x78] sm:$0xff]  ;;  %s486_s13 = smov [#allocation2]  }
   0x4   :  { %400 = vmatpush3.msra.mxu0 %v98_v14  ;;  %v203_v19 = vld [vmem:[%s663_s5 + $0x70] sm:$0xff]  ;;  %410 = vmatprep.subr.mxu1 %v204_v18  ;;  %v202_v20 = vld [vmem:[%s663_s5 + $0x68] sm:$0xff]  ;;  %v201_v21 = vld [vmem:[%s663_s5 + $0x60] sm:$0xff]  ;;  %s356_s14 = sshll.u32 %s486_s13, 4  ;;  %s357_s14 = int_to_ptr.vmem [resolvable:$true] %s356_s14 }
   0x5   :  { %401 = vmatprep.subr.mxu0 %v97_v15  ;;  %411 = vmatpush3.msra.mxu1 %v204_v18  ;;  %v200_v22 = vld [vmem:[%s663_s5 + $0x58] sm:$0xff]  ;;  %v199_v23 = vld [vmem:[%s663_s5 + $0x50] sm:$0xff]  ;;  %v198_v24 = vld [vmem:[%s663_s5 + $0x48] sm:$0xff]  ;;  %s464_s15 = scalar_lea.vmem %s357_s14, 256  ;;  %p469_p1 = scmp.lt.s32.totalorder %s357_s14, %s357_s14 }
   0x6   :  { %402 = vmatpush3.msra.mxu0 %v97_v15  ;;  %412 = vmatprep.subr.mxu1 %v203_v19  ;;  %v197_v25 = vld [vmem:[%s663_s5 + $0x40] sm:$0xff]  ;;  %v196_v26 = vld [vmem:[%s663_s5 + $0x38] sm:$0xff]  ;;  %v195_v27 = vld [vmem:[%s663_s5 + $0x30] sm:$0xff]  ;;  %p465_p0 = scmp.ne.s32.totalorder %s357_s14, %s464_s15  ;;  %p470_p2 = scmp.lt.s32.totalorder %s464_s15, %s464_s15 }
   0x7   :  { %42 = vadd.xlane.f32.xlu0 %v41_v3  ;;  %403 = vmatprep.subr.mxu0 %v96_v16  ;;  %v194_v28 = vld [vmem:[%s663_s5 + $0x28] sm:$0xff]  ;;  %v193_v29 = vld [vmem:[%s663_s5 + $0x20] sm:$0xff]  ;;  %v192_v56 = vld [vmem:[%s663_s5 + $0x18] sm:$0xff] }
   0x8   :  { %404 = vmatpush3.msra.mxu0 %v96_v16  ;;  %413 = vmatpush3.msra.mxu1 %v203_v19  ;;  %v367_v47 = vld [vmem:[%s659_s1] ss:$0 sm:$0xff]  ;;  %v191_v57 = vld [vmem:[%s663_s5 + $0x10] sm:$0xff]  ;;  %v190_v58 = vld [vmem:[%s663_s5 + $0x8] sm:$0xff]  ;;  %p471_p3 = por %p470_p2, %p469_p1 }
   0x9   :  { %405 = vmatprep.subr.mxu0 %v95_v17  ;;  %414 = vmatprep.subr.mxu1 %v202_v20  ;;  %v368_v49 = vld [vmem:[%s660_s2] ss:$0 sm:$0xff] }
   0xa   :  { %406 = vmatpush3.msra.mxu0 %v95_v17  ;;  %415 = vmatpush3.msra.mxu1 %v202_v20  ;;  %v189_v59 = vld [vmem:[%s663_s5] sm:$0xff]  ;;  %p472_p4 = pnand %p471_p3, %p465_p0 }
   0xb   :  { %416 = vmatprep.subr.mxu1 %v201_v21  ;;  %v369_v60 = vld [vmem:[%s662_s4] ss:$0 sm:$0xff] }
   0xc   :  { %417 = vmatpush3.msra.mxu1 %v201_v21 }
   0xd   :  { %418 = vmatprep.subr.mxu1 %v200_v22 }
   0xe   :  { %419 = vmatpush3.msra.mxu1 %v200_v22 }
   0xf   :  { %420 = vmatprep.subr.mxu1 %v199_v23 }
  0x10   :  { %421 = vmatpush3.msra.mxu1 %v199_v23 }
  0x11   :  { %422 = vmatprep.subr.mxu1 %v198_v24 }
  0x12   :  { %423 = vmatpush3.msra.mxu1 %v198_v24 }
  0x13   :  { %424 = vmatprep.subr.mxu1 %v197_v25 }
  0x14   :  { %425 = vmatpush3.msra.mxu1 %v197_v25 }
  0x15   :  { %426 = vmatprep.subr.mxu1 %v196_v26 }
  0x16   :  { %427 = vmatpush3.msra.mxu1 %v196_v26 }
  0x17   :  { %428 = vmatprep.subr.mxu1 %v195_v27 }
  0x18   :  { %429 = vmatpush3.msra.mxu1 %v195_v27 }
  0x19   :  { %430 = vmatprep.subr.mxu1 %v194_v28 }
  0x1a   :  { %431 = vmatpush3.msra.mxu1 %v194_v28 }
  0x1b   :  { %432 = vmatprep.subr.mxu1 %v193_v29 }
  0x1c   :  { %433 = vmatpush3.msra.mxu1 %v193_v29 }
  0x1d   :  { %434 = vmatprep.subr.mxu1 %v192_v56 }
  0x1e   :  { %435 = vmatpush3.msra.mxu1 %v192_v56 }
  0x1f   :  { %436 = vmatprep.subr.mxu1 %v191_v57 }
  0x20   :  { %437 = vmatpush3.msra.mxu1 %v191_v57 }
  0x21   :  { %438 = vmatprep.subr.mxu1 %v190_v58 }
  0x22   :  { %439 = vmatpush3.msra.mxu1 %v190_v58 }
  0x23   :  { %440 = vmatprep.subr.mxu1 %v189_v59 }
  0x24   :  { %441 = vmatpush3.msra.mxu1 %v189_v59 }
  0x8c   :  { %v40_v4 = vpop.xlane.xlu0 %39 }
  0x8d   :  { %v45_v5 = vmul.f32 0.03125, %v40_v4 }
  0x8f   :  { %v554_v6 = vsub.f32 %v542_v0, %v45_v5 }
  0x90   :  { %v43_v7 = vpop.xlane.xlu0 %42 }
  0x91   :  { %v46_v8 = vmul.f32 0.03125, %v43_v7  ;;  %v49_v9 = vmul.f32 %v554_v6, %v554_v6 }
  0x93   :  { %v559_v10 = vsub.f32 %v547_v1, %v46_v8  ;;  %v51_v11 = vsel %vm37_vm0, %v49_v9, 0.0 }
  0x94   :  { %52 = vadd.xlane.f32.xlu1 %v51_v11 }
  0x95   :  { %v50_v12 = vmul.f32 %v559_v10, %v559_v10 }
  0x97   :  { %v54_v13 = vsel %vm37_vm0, %v50_v12, 0.0 }
  0x98   :  { %55 = vadd.xlane.f32.xlu1 %v54_v13 }
 0x11d   :  { %v53_v30 = vpop.xlane.xlu1 %52 }
 0x11e   :  { %v57_v31 = vmul.f32 0.032258064, %v53_v30 }
 0x120   :  { %448 = vrsqrt.f32 %v57_v31  ;;  %vm61_vm1 = vcmp.eq.f32.partialorder %v57_v31, inf  ;;  %v64_v36 = vand.u32 2147483648, %v57_v31  ;;  %vm63_vm2 = vcmp.eq.f32.partialorder %v57_v31, 0.0 }
 0x121   :  { %v56_v32 = vpop.xlane.xlu1 %55 }
 0x122   :  { %v58_v33 = vmul.f32 0.032258064, %v56_v32 }
 0x124   :  { %450 = vrsqrt.f32 %v58_v33  ;;  %vm68_vm3 = vcmp.eq.f32.partialorder %v58_v33, inf  ;;  %v71_v42 = vand.u32 2147483648, %v58_v33  ;;  %vm70_vm4 = vcmp.eq.f32.partialorder %v58_v33, 0.0 }
 0x12d   :  { %v449_v34 = vpop.eup %448 }
 0x12e   :  { %v60_v35 = vmul.f32 %v449_v34, %v57_v31 }
 0x130   :  { %v62_v37 = vsel %vm61_vm1, %v57_v31, %v60_v35 }
 0x131   :  { %v451_v38 = vpop.eup %450  ;;  %v65_v39 = vsel %vm63_vm2, %v64_v36, %v62_v37 }
 0x132   :  { %v67_v40 = vmul.f32 %v451_v38, %v58_v33  ;;  %v73_v41 = vadd.f32 1e-06, %v65_v39  ;;  %v373_v39 = vld [vmem:[%s665_s7] ss:$0 sm:$0xff] }
 0x134   :  { %v69_v43 = vsel %vm68_vm3, %v58_v33, %v67_v40  ;;  %452 = vrcp.f32 %v73_v41  ;;  %v374_v41 = vld [vmem:[%s666_s8] ss:$0 sm:$0xff] }
 0x135   :  { %v72_v44 = vsel %vm70_vm4, %v71_v42, %v69_v43 }
 0x136   :  { %v74_v45 = vadd.f32 1e-06, %v72_v44 }
 0x138   :  { %454 = vrcp.f32 %v74_v45 }
 0x141   :  { %v453_v46 = vpop.eup %452 }
 0x142   :  { %v77_v48 = vmul.f32 %v453_v46, %v554_v6  ;;  %v372_v6 = vld [vmem:[%s664_s6] ss:$0 sm:$0xff] }
 0x144   :  { %v85_v50 = vmul.f32 %v367_v47, %v77_v48 }
 0x145   :  { %v455_v51 = vpop.eup %454 }
 0x146   :  { %v78_v52 = vmul.f32 %v455_v51, %v559_v10  ;;  %v93_v53 = vadd.f32 %v368_v49, %v85_v50 }
 0x148   :  { %v86_v54 = vmul.f32 %v367_v47, %v78_v52  ;;  %407 = vmatprep.mubr.msk.f32.mxu0 %vm37_vm0, %v93_v53 }
 0x14a   :  { %v94_v55 = vadd.f32 %v368_v49, %v86_v54 }
 0x14c   :  { %408 = vmatmul.mubr.msk.f32.vlgmr.msra.gmra.mxu0 %vm37_vm0, %v94_v55 }
 0x20c   :  { %v409_v61 = vpop.f32.mrf.mxu0 }
 0x20d   :  { %v184_v62 = vadd.f32 %v409_v61, %v369_v60 }
 0x20e   :  { %v178_v63 = vpop.f32.mrf.mxu0 }
 0x20f   :  { %v179_v2 = vadd.f32 %v369_v60, %v178_v63  ;;  %v188_v4 = vmax.f32 %v184_v62, 0.0 }
 0x211   :  { %v187_v3 = vmax.f32 %v179_v2, 0.0 }
 0x213   :  { %442 = vmatprep.mubr.f32.mxu1 %v187_v3 }
 0x214   :  { %443 = vmatmul.mubr.f32.vlgmr.msra.gmra.mxu1 %v188_v4 }
 0x2d4   :  { %v444_v5 = vpop.f32.mrf.mxu1 }
 0x2d5   :  { %v281_v7 = vadd.f32 %v444_v5, %v547_v1 }
 0x2d6   :  { %v271_v8 = vpop.f32.mrf.mxu1 }
 0x2d7   :  { %v280_v9 = vadd.f32 %v271_v8, %v542_v0  ;;  %v290_v10 = vadd.f32 %v372_v6, %v281_v7 }
 0x2d9   :  { %v296_v11 = vsel %vm37_vm0, %v290_v10, 0.0  ;;  %v289_v12 = vadd.f32 %v372_v6, %v280_v9 }
 0x2da   :  { %297 = vadd.xlane.f32.xlu1 %v296_v11 }
 0x2db   :  { %v293_v13 = vsel %vm37_vm0, %v289_v12, 0.0 }
 0x2dc   :  { %294 = vadd.xlane.f32.xlu0 %v293_v13 }
 0x363   :  { %v298_v14 = vpop.xlane.xlu1 %297 }
 0x364   :  { %v300_v15 = vmul.f32 0.03125, %v298_v14 }
 0x365   :  { %v295_v16 = vpop.xlane.xlu0 %294 }
 0x366   :  { %v302_v17 = vsub.f32 %v290_v10, %v300_v15  ;;  %v299_v18 = vmul.f32 0.03125, %v295_v16 }
 0x368   :  { %v301_v19 = vsub.f32 %v289_v12, %v299_v18  ;;  %v304_v20 = vmul.f32 %v302_v17, %v302_v17 }
 0x36a   :  { %v308_v1 = vsel %vm37_vm0, %v304_v20, 0.0  ;;  %v303_v21 = vmul.f32 %v301_v19, %v301_v19 }
 0x36b   :  { %309 = vadd.xlane.f32.xlu1 %v308_v1 }
 0x36c   :  { %v305_v0 = vsel %vm37_vm0, %v303_v21, 0.0 }
 0x36d   :  { %306 = vadd.xlane.f32.xlu0 %v305_v0 }
 0x3f4   :  { %v310_v22 = vpop.xlane.xlu1 %309 }
 0x3f5   :  { %v312_v23 = vmul.f32 0.032258064, %v310_v22 }
 0x3f6   :  { %v307_v24 = vpop.xlane.xlu0 %306 }
 0x3f7   :  { %456 = vrsqrt.f32 %v312_v23  ;;  %v311_v25 = vmul.f32 0.032258064, %v307_v24  ;;  %vm322_vm5 = vcmp.eq.f32.partialorder %v312_v23, inf  ;;  %v325_v28 = vand.u32 2147483648, %v312_v23 }
 0x3f8   :  { %vm324_vm6 = vcmp.eq.f32.partialorder %v312_v23, 0.0 }
 0x3f9   :  { %458 = vrsqrt.f32 %v311_v25  ;;  %vm315_vm7 = vcmp.eq.f32.partialorder %v311_v25, inf  ;;  %v318_v34 = vand.u32 2147483648, %v311_v25  ;;  %vm317_vm8 = vcmp.eq.f32.partialorder %v311_v25, 0.0 }
 0x404   :  { %v457_v26 = vpop.eup %456 }
 0x405   :  { %v321_v27 = vmul.f32 %v457_v26, %v312_v23 }
 0x406   :  { %v459_v29 = vpop.eup %458 }
 0x407   :  { %v323_v30 = vsel %vm322_vm5, %v312_v23, %v321_v27  ;;  %v314_v32 = vmul.f32 %v459_v29, %v311_v25 }
 0x408   :  { %v326_v31 = vsel %vm324_vm6, %v325_v28, %v323_v30 }
 0x409   :  { %v328_v33 = vadd.f32 1e-06, %v326_v31  ;;  %v316_v35 = vsel %vm315_vm7, %v311_v25, %v314_v32 }
 0x40a   :  { %v319_v36 = vsel %vm317_vm8, %v318_v34, %v316_v35 }
 0x40b   :  { %460 = vrcp.f32 %v328_v33  ;;  %v327_v37 = vadd.f32 1e-06, %v319_v36 }
 0x40d   :  { %462 = vrcp.f32 %v327_v37 }
 0x418   :  { %v461_v38 = vpop.eup %460 }
 0x419   :  { %v332_v40 = vmul.f32 %v461_v38, %v302_v17 }
 0x41a   :  { %v463_v42 = vpop.eup %462 }
 0x41b   :  { %v340_v43 = vmul.f32 %v373_v39, %v332_v40  ;;  %v331_v44 = vmul.f32 %v463_v42, %v301_v19 }
 0x41d   :  { %v348_v45 = vadd.f32 %v374_v41, %v340_v43  ;;  %v339_v46 = vmul.f32 %v373_v39, %v331_v44 }
 0x41f   :  { %350 = vst.msk [vmem:[#allocation2 + $0x8] sm:$0xff] %vm37_vm0, %v348_v45  ;;  %v347_v47 = vadd.f32 %v374_v41, %v339_v46 }
 0x421   :  { %349 = vst.msk [vmem:[#allocation2] sm:$0xff] %vm37_vm0, %v347_v47 }
 0x422   :  { %475 = shalt.err (!%p472_p4)
}
 0x423   :  { %s487_s7 = smov 128   ;;  %s488_s8 = smov 8  }
 0x424   :  { %362 = dma.vmem_to_hbm [thread:$0]  %s357_s14, 256, %s667_s9, [#allocation3], %s487_s7, %s487_s7, %s488_s8  }
 0x425   :  { %484 = dma.done.wait [#allocation3], 256  }
 0x426   :  { %485 = vsyncadd [#allocation3], 4294967040 }
 0x427   :  { %366 = vsyncpa [#allocation3], 1 }

// kernel: fwd.4
= control target key start
LH: loop header
LB: loop body
LE: loop exit
PB: predicated region body
PF: predicated region fallthrough
CT: control target
= control target key end

     0   :  { %12 = vsyncpa [#allocation4], 0  ;;  %s1814_s24 = smov 0   ;;  %s1816_s25 = smov 0   ;;  %s1993_s0 = inlined_call_operand.vmem [shape: f32[2,8,32], index: 0, kind: input, shape index: {}]   ;;  %s1994_s1 = inlined_call_operand.vmem [shape: f32[1,32], index: 1, kind: input, shape index: {}]   ;;  %s1995_s2 = inlined_call_operand.vmem [shape: f32[1,32], index: 2, kind: input, shape index: {}]   ;;  %s1996_s3 = inlined_call_operand.vmem [shape: f32[32,96], index: 3, kind: input, shape index: {}]   ;;  %s1997_s4 = inlined_call_operand.vmem [shape: f32[1,96], index: 4, kind: input, shape index: {}]   ;;  %s1998_s5 = inlined_call_operand.hbm [shape: f32[32,32], index: 5, kind: input, shape index: {}]   ;;  %s1999_s6 = inlined_call_operand.vmem [shape: f32[1,32], index: 6, kind: input, shape index: {}]   ;;  %s2000_s7 = inlined_call_operand.vmem [shape: f32[2,8,32], index: 7, kind: output, shape index: {}]  }
   0x1   :  { %s1818_s26 = smov 0  }
   0x2 LB: > { %s1502_s27 = sadd.s32 4294967295, %s1756_s26   ;;  %s30_s28 = sadd.s32 1, %s1752_s25  ;;  %s1756_s26 = sphi %s1818_s26, %s18_s26   ;;  %s1752_s25 = sphi %s1816_s25, %s2004_s25   ;;  %s1748_s24 = sphi %s1814_s24, %s2003_s24  }
   0x3   : > { %p32_p0 = scmp.ge.s32.totalorder %s30_s28, 2  ;;  %p1504_p1 = scmp.ge.s32.totalorder %s1756_s26, 1 }
   0x4   : > { %p215_p2 = scmp.lt.s32.totalorder %s1756_s26, 3  ;;  %p1839_p4 = scmp.eq.s32.totalorder %s1502_s27, 0 }
   0x5   : > { %s2006_s28 = smov (%p32_p0, %s30_s28), 0  ;;  %s1758_s8 = smov [#allocation3]  }
   0x6   : > { %p1835_p3 = pnand %p1504_p1, %p215_p2  ;;  %s239_s9 = sshll.u32 %s1758_s8, 4  ;;  %s240_s9 = int_to_ptr.vmem [resolvable:$true] %s239_s9 }
   0x7   : > { %s1715_s10 = scalar_lea.vmem %s240_s9, 512  ;;  %p1723_p11 = scmp.lt.s32.totalorder %s240_s9, %s240_s9 }
   0x8   : > { %p1638_p5 = pneg %p1835_p3  ;;  %p1716_p8 = scmp.ne.s32.totalorder %s240_s9, %s1715_s10 }
   0x9   : > { %p1724_p12 = scmp.lt.s32.totalorder %s1715_s10, %s1715_s10 }
   0xa   : > { %p1639_p6 = pnand %p1839_p4, %p1638_p5 }
   0xb   : > { %p1725_p13 = por %p1724_p12, %p1723_p11 }
   0xc   : > { %p1706_p7 = pneg %p1639_p6 }
   0xe   : > { %p1718_p9 = pnand %p1716_p8, %p1706_p7 }
  0x10   : > { %p1719_p10 = pneg %p1718_p9 }
  0x12   : > { %p1726_p0 = pnand %p1725_p13, %p1719_p10 }
  0x14   : > { %1729 = shalt.err (!%p1726_p0)
}
  0x15   : > { %s1759_s11 = smov 128   ;;  %s1760_s12 = smov 8  }
  0x16   : > { %1641 = dma.hbm_to_vmem [thread:$0]  (!%p1639_p6), %s1998_s5, 512, %s240_s9, [#allocation4], %s1759_s11, %s1759_s11, %s1760_s12  }
  0x17   : > { %265 = sbr.rel (%p1835_p3) target bundleno = 2334 (0x91e), region = 48 }
  0x1c   : > { %1743 = dma.done.wait (%p1839_p4), [#allocation4], 512  }
  0x1d   : > { %1745 = vsyncadd (%p1839_p4), [#allocation4], 4294966784  ;;  %p298_p1 = scmp.lt.s32.totalorder %s1748_s24, 1  ;;  %vm316_vm0 = vcmask 261120   ;;  %v355_v7 = vld [vmem:[%s1996_s3 + $0x18] sm:$0xff]  ;;  %v1761_v8 = vmov 0.0  }
  0x1e   : > { %1563 = vmatprep.subr.mxu0 %v1761_v8  ;;  %v354_v9 = vld [vmem:[%s1996_s3 + $0x10] sm:$0xff]  ;;  %vm1762_vm1 = vmmov 0   ;;  %1574 = vmatprep.subr.mxu1 %v1761_v8  ;;  %v353_v10 = vld [vmem:[%s1996_s3 + $0x8] sm:$0xff]  ;;  %v352_v11 = vld [vmem:[%s1996_s3] sm:$0xff]  ;;  %vm436_vm4 = vcmask 785408   ;;  %s1763_s14 = smov 96  }
  0x1f   : > { %s2008_s24 = smov (!%p298_p1, %s1748_s24), 1  ;;  %1571 = vmatprep.mubr.msk.f32.mxu0 %vm1762_vm1, %v1761_v8  ;;  %1564 = vmatpush3.msra.mxu0 %v355_v7  ;;  %v1511_v21 = vld [vmem:[%s1994_s1] ss:$0 sm:$0xff]  ;;  %s1764_s16 = smov 120   ;;  %vm447_vm5 = vcmask 64512   ;;  %v610_v52 = vld [vmem:[#allocation3] sm:$0xff] }
  0x20   : > { %s1509_s15 = sshll.u32 %s2008_s24, 3  ;;  %1565 = vmatprep.subr.mxu0 %v1761_v8  ;;  %1576 = vmatprep.mubr.msk.f32.mxu1 %vm1762_vm1, %v1761_v8  ;;  %v1512_v23 = vld [vmem:[%s1995_s2] ss:$0 sm:$0xff]  ;;  %s1765_s17 = smov 88   ;;  %v776_v53 = vld [vmem:[#allocation3 + $0x8] sm:$0xff] }
  0x21   : > { %s301_s18 = scalar_lea.vmem %s1993_s0, %s1509_s15  ;;  %1566 = vmatpush3.msra.mxu0 %v354_v9  ;;  %v1513_v26 = vld [vmem:[%s1997_s4] ss:$0 sm:$0xff]  ;;  %s1767_s19 = smov 56  }
  0x22   : > { %v1866_v0 = vld [vmem:[%s301_s18] sm:$0xff]  ;;  %1567 = vmatprep.subr.mxu0 %v1761_v8  ;;  %s1766_s18 = smov 64   ;;  %s1768_s20 = smov 80  }
  0x23   : > { %v317_v1 = vsel %vm316_vm0, %v1866_v0, 0.0  ;;  %1568 = vmatpush3.msra.mxu0 %v353_v10  ;;  %s1769_s21 = smov 112   ;;  %s1770_s22 = smov 48  }
  0x24   : > { %318 = vadd.xlane.f32.xlu0 %v317_v1  ;;  %1569 = vmatprep.subr.mxu0 %v1761_v8  ;;  %s1771_s23 = smov 104   ;;  %s1772_s27 = smov 72  }
  0x25   : > { %1570 = vmatpush3.msra.mxu0 %v352_v11  ;;  %s1773_s29 = smov 40   ;;  %s308_s11 = scalar_lea.vmem %s2000_s7, %s1509_s15 }
  0x26   : > { %1584 = vmatprep.subr.mxu0 %v1761_v8 }
  0xad   : > { %v319_v2 = vpop.xlane.xlu0 %318 }
  0xae   : > { %v321_v3 = vmul.f32 0.03125, %v319_v2 }
  0xb0   : > { %v322_v4 = vsub.f32 %v1866_v0, %v321_v3 }
  0xb2   : > { %v323_v5 = vmul.f32 %v322_v4, %v322_v4 }
  0xb4   : > { %v324_v6 = vsel %vm316_vm0, %v323_v5, 0.0 }
  0xb5   : > { %325 = vadd.xlane.f32.xlu0 %v324_v6 }
 0x13e   : > { %v326_v12 = vpop.xlane.xlu0 %325 }
 0x13f   : > { %v327_v13 = vmul.f32 0.032258064, %v326_v12 }
 0x141   : > { %1684 = vrsqrt.f32 %v327_v13  ;;  %vm330_vm2 = vcmp.eq.f32.partialorder %v327_v13, inf  ;;  %v333_v16 = vand.u32 2147483648, %v327_v13  ;;  %vm332_vm3 = vcmp.eq.f32.partialorder %v327_v13, 0.0 }
 0x14e   : > { %v1685_v14 = vpop.eup %1684 }
 0x14f   : > { %v329_v15 = vmul.f32 %v1685_v14, %v327_v13 }
 0x151   : > { %v331_v17 = vsel %vm330_vm2, %v327_v13, %v329_v15 }
 0x152   : > { %v334_v18 = vsel %vm332_vm3, %v333_v16, %v331_v17 }
 0x153   : > { %v335_v19 = vadd.f32 1e-06, %v334_v18 }
 0x155   : > { %1686 = vrcp.f32 %v335_v19 }
 0x162   : > { %v1687_v20 = vpop.eup %1686 }
 0x163   : > { %v337_v22 = vmul.f32 %v1687_v20, %v322_v4  ;;  %v1088_v20 = vld [vmem:[#allocation3 + $0x10] sm:$0xff] }
 0x165   : > { %v344_v24 = vmul.f32 %v1511_v21, %v337_v22 }
 0x167   : > { %v351_v25 = vadd.f32 %v1512_v23, %v344_v24 }
 0x169   : > { %1572 = vmatmul.mubr.msk.f32.vlgmr.msra.gmra.mxu0 %vm316_vm0, %v351_v25 }
 0x16a   : > { %1586 = vmatprep.mubr.msk.f32.mxu0 %vm1762_vm1, %v1761_v8 }
 0x229   : > { %v432_v27 = vpop.f32.mrf.mxu0 }
 0x22a   : > { %v433_v28 = vadd.f32 %v1513_v26, %v432_v27 }
 0x22b   : > { %v1573_v29 = vpop.f32.mrf.mxu0 }
 0x22c   : > { %437 = vst.msk [vmem:[#allocation2] sm:$0xff] %vm436_vm4, %v433_v28 }
 0x233   : > { %v1906_v30 = vld [vmem:[#allocation2] sm:$0xff] }
 0x234   : > { %445 = vrot.lane.b32.xlu1 %v1906_v30, %s1763_s14  ;;  %611 = vrot.lane.b32.xlu0 %v1906_v30, %s1764_s16 }
 0x238   : > { %613 = vrot.lane.b32.xlu1 %v1906_v30, %s1765_s17 }
 0x2a6   : > { %v446_v31 = vpop.permute.xlu1 %445  ;;  %v612_v33 = vpop.permute.xlu0 %611 }
 0x2a7   : > { %1575 = vmatpush3.xpose.msk.msra.mxu1 %vm447_vm5, %v446_v31 }
 0x2a8   : > { %1579 = vmatprep.subr.mxu1 %v1761_v8 }
 0x2aa   : > { %v614_v32 = vpop.permute.xlu1 %613  ;;  %1577 = vmatmul.mubr.msk.f32.vlgmr.msra.gmra.mxu1 %vm447_vm5, %v1906_v30 }
 0x2ab   : > { %1585 = vmatpush3.xpose.msk.msra.mxu0 %vm447_vm5, %v614_v32  ;;  %1581 = vmatprep.mubr.msk.f32.mxu1 %vm1762_vm1, %v1761_v8 }
 0x2ac   : > { %1594 = vmatprep.subr.mxu0 %v1761_v8 }
 0x2ae   : > { %1587 = vmatmul.mubr.msk.f32.vlgmr.msra.gmra.mxu0 %vm447_vm5, %v612_v33 }
 0x2af   : > { %1596 = vmatprep.mubr.msk.f32.mxu0 %vm1762_vm1, %v1761_v8  ;;  %1595 = vmatpush3.msra.mxu0 %v776_v53 }
 0x2b0   : > { %1604 = vmatprep.subr.mxu0 %v1761_v8 }
 0x36a   : > { %v519_v34 = vpop.f32.mrf.mxu1 }
 0x36b   : > { %v523_v35 = vsel %vm447_vm5, %v519_v34, -inf }
 0x36c   : > { %524 = vmax.xlane.f32.xlu1 %v523_v35  ;;  %v1578_v36 = vpop.f32.mrf.mxu1 }
 0x36e   : > { %v685_v37 = vpop.f32.mrf.mxu0 }
 0x36f   : > { %v689_v38 = vsel %vm447_vm5, %v685_v37, -inf }
 0x370   : > { %690 = vmax.xlane.f32.xlu0 %v689_v38  ;;  %v1588_v39 = vpop.f32.mrf.mxu0  ;;  %v1328_v38 = vld [vmem:[#allocation3 + $0x18] sm:$0xff] }
 0x37d   : > { %533 = vrot.lane.b32.xlu1 %v1906_v30, %s1766_s18 }
 0x386   : > { %699 = vrot.lane.b32.xlu0 %v1906_v30, %s1767_s19 }
 0x38a   : > { %925 = vrot.lane.b32.xlu0 %v1906_v30, %s1768_s20 }
 0x38e   : > { %923 = vrot.lane.b32.xlu0 %v1906_v30, %s1769_s21 }
 0x3f5   : > { %v525_v40 = vpop.xlane.xlu1 %524 }
 0x3f6   : > { %v526_v41 = vsub.f32 %v519_v34, %v525_v40 }
 0x3f8   : > { %v527_v42 = vmul.f32 1.442695, %v526_v41 }
 0x3f9   : > { %v534_v43 = vpop.permute.xlu1 %533  ;;  %v691_v44 = vpop.xlane.xlu0 %690 }
 0x3fa   : > { %1688 = vpow2.f32 %v527_v42  ;;  %v692_v45 = vsub.f32 %v685_v37, %v691_v44  ;;  %1580 = vmatpush3.msra.mxu1 %v534_v43 }
 0x3fb   : > { %1589 = vmatprep.subr.mxu1 %v1761_v8 }
 0x3fc   : > { %v693_v46 = vmul.f32 1.442695, %v692_v45  ;;  %v1531_v45 = vld [vmem:[%s1999_s6] ss:$0 sm:$0xff] }
 0x3fd   : > { %v700_v48 = vpop.permute.xlu0 %699 }
 0x3fe   : > { %1690 = vpow2.f32 %v693_v46 }
 0x401   : > { %v926_v54 = vpop.permute.xlu0 %925 }
 0x405   : > { %v924_v55 = vpop.permute.xlu0 %923 }
 0x407   : > { %v1689_v47 = vpop.eup %1688 }
 0x408   : > { %1582 = vmatmul.mubr.msk.f32.vlgmr.msra.gmra.mxu1 %vm447_vm5, %v1689_v47  ;;  %v529_v49 = vsel %vm447_vm5, %v1689_v47, 0.0 }
 0x409   : > { %1590 = vmatpush3.msra.mxu1 %v700_v48  ;;  %530 = vadd.xlane.f32.xlu0 %v529_v49 }
 0x40a   : > { %1591 = vmatprep.mubr.msk.f32.mxu1 %vm1762_vm1, %v1761_v8  ;;  %1599 = vmatprep.subr.mxu1 %v1761_v8 }
 0x40b   : > { %v1691_v50 = vpop.eup %1690 }
 0x40c   : > { %1592 = vmatmul.mubr.msk.f32.vlgmr.msra.gmra.mxu1 %vm447_vm5, %v1691_v50  ;;  %v695_v51 = vsel %vm447_vm5, %v1691_v50, 0.0 }
 0x40d   : > { %696 = vadd.xlane.f32.xlu1 %v695_v51  ;;  %1601 = vmatprep.mubr.msk.f32.mxu1 %vm1762_vm1, %v1761_v8 }
 0x40e   : > { %1600 = vmatpush3.msra.mxu1 %v610_v52 }
 0x40f   : > { %1609 = vmatprep.subr.mxu1 %v1761_v8 }
 0x41e   : > { %1011 = vrot.lane.b32.xlu1 %v1906_v30, %s1770_s22 }
 0x41f   : > { %1163 = vrot.lane.b32.xlu0 %v1906_v30, %s1771_s23 }
 0x492   : > { %v531_v56 = vpop.xlane.xlu0 %530 }
 0x493   : > { %1692 = vrcp.f32 %v531_v56 }
 0x496   : > { %v697_v57 = vpop.xlane.xlu1 %696  ;;  %v1164_v19 = vpop.permute.xlu0 %1163 }
 0x497   : > { %1694 = vrcp.f32 %v697_v57 }
 0x49a   : > { %v1012_v62 = vpop.permute.xlu1 %1011 }
 0x4a0   : > { %v1693_v58 = vpop.eup %1692 }
 0x4a4   : > { %v1695_v63 = vpop.eup %1694 }
 0x4c8   : > { %v605_v59 = vpop.f32.mrf.mxu1 }
 0x4c9   : > { %v609_v60 = vmul.f32 %v1693_v58, %v605_v59 }
 0x4ca   : > { %v1583_v61 = vpop.f32.mrf.mxu1 }
 0x4cb   : > { %1602 = vmatmul.mubr.msk.f32.vlgmr.msra.gmra.mxu1 %vm447_vm5, %v609_v60 }
 0x4cc   : > { %1610 = vmatpush3.msra.mxu1 %v1012_v62  ;;  %v771_v1 = vpop.f32.mrf.mxu1  ;;  %1611 = vmatprep.mubr.msk.f32.mxu1 %vm1762_vm1, %v1761_v8 }
 0x4cd   : > { %v775_v2 = vmul.f32 %v1695_v63, %v771_v1  ;;  %1619 = vmatprep.subr.mxu1 %v1761_v8 }
 0x4ce   : > { %v1593_v3 = vpop.f32.mrf.mxu1 }
 0x4cf   : > { %1597 = vmatmul.mubr.msk.f32.vlgmr.msra.gmra.mxu0 %vm447_vm5, %v775_v2 }
 0x4d0   : > { %1605 = vmatpush3.xpose.msk.msra.mxu0 %vm447_vm5, %v926_v54  ;;  %1606 = vmatprep.mubr.msk.f32.mxu0 %vm1762_vm1, %v1761_v8 }
 0x4d1   : > { %1614 = vmatprep.subr.mxu0 %v1761_v8 }
 0x4d3   : > { %1607 = vmatmul.mubr.msk.f32.vlgmr.msra.gmra.mxu0 %vm447_vm5, %v924_v55 }
 0x4d4   : > { %1616 = vmatprep.mubr.msk.f32.mxu0 %vm1762_vm1, %v1761_v8  ;;  %1615 = vmatpush3.msra.mxu0 %v1088_v20 }
 0x4d5   : > { %1624 = vmatprep.subr.mxu0 %v1761_v8 }
 0x58b   : > { %v919_v4 = vpop.f32.mrf.mxu1 }
 0x58d   : > { %v1603_v5 = vpop.f32.mrf.mxu1 }
 0x58f   : > { %v846_v6 = vpop.f32.mrf.mxu0 }
 0x590   : > { %v920_v7 = vadd.f32 %v919_v4, %v846_v6 }
 0x591   : > { %v1598_v9 = vpop.f32.mrf.mxu0 }
 0x593   : > { %v997_v10 = vpop.f32.mrf.mxu0 }
 0x594   : > { %v1001_v11 = vsel %vm447_vm5, %v997_v10, -inf }
 0x595   : > { %1002 = vmax.xlane.f32.xlu1 %v1001_v11  ;;  %v1608_v12 = vpop.f32.mrf.mxu0 }
 0x5a6   : > { %1165 = vrot.lane.b32.xlu1 %v1906_v30, %s1772_s27 }
 0x61e   : > { %v1003_v13 = vpop.xlane.xlu1 %1002 }
 0x61f   : > { %v1004_v14 = vsub.f32 %v997_v10, %v1003_v13 }
 0x621   : > { %v1005_v15 = vmul.f32 1.442695, %v1004_v14 }
 0x622   : > { %v1166_v17 = vpop.permute.xlu1 %1165 }
 0x623   : > { %1696 = vpow2.f32 %v1005_v15 }
 0x630   : > { %v1697_v16 = vpop.eup %1696 }
 0x631   : > { %1612 = vmatmul.mubr.msk.f32.vlgmr.msra.gmra.mxu1 %vm447_vm5, %v1697_v16  ;;  %v1007_v18 = vsel %vm447_vm5, %v1697_v16, 0.0 }
 0x632   : > { %1620 = vmatpush3.xpose.msk.msra.mxu1 %vm447_vm5, %v1166_v17  ;;  %1008 = vadd.xlane.f32.xlu1 %v1007_v18 }
 0x633   : > { %1621 = vmatprep.mubr.msk.f32.mxu1 %vm1762_vm1, %v1761_v8  ;;  %1629 = vmatprep.subr.mxu1 %v1761_v8 }
 0x635   : > { %1622 = vmatmul.mubr.msk.f32.vlgmr.msra.gmra.mxu1 %vm447_vm5, %v1164_v19 }
 0x636   : > { %1631 = vmatprep.mubr.msk.f32.mxu1 %vm1762_vm1, %v1761_v8  ;;  %1630 = vmatpush3.msra.mxu1 %v1328_v38 }
 0x643   : > { %1251 = vrot.lane.b32.xlu1 %v1906_v30, %s1773_s29 }
 0x6bb   : > { %v1009_v21 = vpop.xlane.xlu1 %1008 }
 0x6bc   : > { %1698 = vrcp.f32 %v1009_v21 }
 0x6bf   : > { %v1252_v26 = vpop.permute.xlu1 %1251 }
 0x6c9   : > { %v1699_v22 = vpop.eup %1698 }
 0x6f1   : > { %v1083_v23 = vpop.f32.mrf.mxu1 }
 0x6f2   : > { %v1087_v24 = vmul.f32 %v1699_v22, %v1083_v23 }
 0x6f3   : > { %v1613_v25 = vpop.f32.mrf.mxu1 }
 0x6f4   : > { %1617 = vmatmul.mubr.msk.f32.vlgmr.msra.gmra.mxu0 %vm447_vm5, %v1087_v24 }
 0x6f5   : > { %1625 = vmatpush3.msra.mxu0 %v1252_v26  ;;  %v1237_v27 = vpop.f32.mrf.mxu1  ;;  %1626 = vmatprep.mubr.msk.f32.mxu0 %vm1762_vm1, %v1761_v8 }
 0x6f6   : > { %v1241_v28 = vsel %vm447_vm5, %v1237_v27, -inf }
 0x6f7   : > { %1242 = vmax.xlane.f32.xlu0 %v1241_v28  ;;  %v1623_v29 = vpop.f32.mrf.mxu1 }
 0x780   : > { %v1243_v30 = vpop.xlane.xlu0 %1242 }
 0x781   : > { %v1244_v31 = vsub.f32 %v1237_v27, %v1243_v30 }
 0x783   : > { %v1245_v32 = vmul.f32 1.442695, %v1244_v31 }
 0x785   : > { %1700 = vpow2.f32 %v1245_v32 }
 0x792   : > { %v1701_v33 = vpop.eup %1700 }
 0x793   : > { %1627 = vmatmul.mubr.msk.f32.vlgmr.msra.gmra.mxu0 %vm447_vm5, %v1701_v33  ;;  %v1247_v34 = vsel %vm447_vm5, %v1701_v33, 0.0 }
 0x794   : > { %1248 = vadd.xlane.f32.xlu0 %v1247_v34 }
 0x7b4   : > { %v1158_v35 = vpop.f32.mrf.mxu0 }
 0x7b5   : > { %v1162_v36 = vadd.f32 %v1158_v35, %v920_v7 }
 0x7b6   : > { %v1618_v37 = vpop.f32.mrf.mxu0 }
 0x81d   : > { %v1249_v8 = vpop.xlane.xlu0 %1248 }
 0x81e   : > { %1702 = vrcp.f32 %v1249_v8 }
 0x82b   : > { %v1703_v39 = vpop.eup %1702 }
 0x853   : > { %v1323_v40 = vpop.f32.mrf.mxu0 }
 0x854   : > { %v1327_v41 = vmul.f32 %v1703_v39, %v1323_v40 }
 0x855   : > { %v1628_v42 = vpop.f32.mrf.mxu0 }
 0x856   : > { %1632 = vmatmul.mubr.msk.f32.vlgmr.msra.gmra.mxu1 %vm447_vm5, %v1327_v41 }
 0x916   : > { %v1398_v43 = vpop.f32.mrf.mxu1 }
 0x917   : > { %v1402_v44 = vadd.f32 %v1398_v43, %v1162_v36 }
 0x918   : > { %v1633_v46 = vpop.f32.mrf.mxu1 }
 0x919   : > { %v1403_v47 = vadd.f32 %v1402_v44, %v1866_v0 }
 0x91b   : > { %v1411_v48 = vadd.f32 %v1531_v45, %v1403_v47 }
 0x91d   : > { %1413 = vst.msk [vmem:[%s308_s11] sm:$0xff] %vm316_vm0, %v1411_v48 }
 0x91e PF: > { %s18_s26 = sadd.s32 1, %s1756_s26   ;;  %s2003_s24 = smov %s1752_s25 }
 0x91f   : > { %p15_p2 = scmp.ge.s32.totalorder %s18_s26, 4   ;;  %s2004_s25 = smov %s2006_s28 }
 0x921   :  { %17 = sbr.rel (!%p15_p2) target bundleno = 2 (0x2), region = 89 }
 0x926   :  { %1439 = vsyncpa [#allocation4], 1 }
 0x927   :  { %1441 = vsyncpa [#allocation4 + $0x1], 1 }

// kernel: fwd.6
= control target key start
LH: loop header
LB: loop body
LE: loop exit
PB: predicated region body
PF: predicated region fallthrough
CT: control target
= control target key end

     0   :  { %s1738_s24 = smov 0   ;;  %s1740_s25 = smov 0   ;;  %s1903_s0 = inlined_call_operand.vmem [shape: f32[2,8,32], index: 0, kind: input, shape index: {}]   ;;  %s1904_s1 = inlined_call_operand.vmem [shape: f32[1,32], index: 1, kind: input, shape index: {}]   ;;  %s1905_s2 = inlined_call_operand.vmem [shape: f32[1,32], index: 2, kind: input, shape index: {}]   ;;  %s1906_s3 = inlined_call_operand.vmem [shape: f32[32,96], index: 3, kind: input, shape index: {}]   ;;  %s1907_s4 = inlined_call_operand.vmem [shape: f32[1,96], index: 4, kind: input, shape index: {}]   ;;  %s1908_s5 = inlined_call_operand.vmem [shape: f32[32,32], index: 5, kind: input, shape index: {}]   ;;  %s1909_s6 = inlined_call_operand.vmem [shape: f32[1,32], index: 6, kind: input, shape index: {}]   ;;  %s1910_s7 = inlined_call_operand.vmem [shape: f32[2,8,32], index: 7, kind: output, shape index: {}]  }
   0x1   :  { %s1742_s26 = smov 0  }
   0x2 LB: > { %s29_s27 = sadd.s32 1, %s1679_s25  ;;  %p1478_p0 = scmp.ge.s32.totalorder %s1683_s26, 1  ;;  %s1683_s26 = sphi %s1742_s26, %s17_s26   ;;  %s1679_s25 = sphi %s1740_s25, %s1912_s25   ;;  %s1675_s24 = sphi %s1738_s24, %s1911_s24  }
   0x3   : > { %p31_p1 = scmp.ge.s32.totalorder %s29_s27, 2  ;;  %p250_p2 = scmp.lt.s32.totalorder %s1683_s26, 3 }
   0x5   : > { %s1914_s27 = smov (%p31_p1, %s29_s27), 0  ;;  %p251_p3 = pnand %p1478_p0, %p250_p2 }
   0x6   : > { %p283_p4 = scmp.lt.s32.totalorder (!%p251_p3), %s1675_s24, 1  ;;  %s1687_s23 = smov (!%p251_p3), 96  }
   0x7   : > { %254 = sbr.rel (%p251_p3) target bundleno = 2315 (0x90b), region = 48  ;;  %s1688_s29 = smov (!%p251_p3), 120  }
   0x8   : > { %s1689_s30 = smov (!%p251_p3), 88   ;;  %s1691_s9 = smov (!%p251_p3), 56  }
   0x9   : > { %s1692_s10 = smov (!%p251_p3), 80   ;;  %s1693_s11 = smov (!%p251_p3), 112  }
   0xa   : > { %s1694_s12 = smov (!%p251_p3), 48   ;;  %s1695_s13 = smov (!%p251_p3), 104  }
   0xb   : > { %s1696_s18 = smov (!%p251_p3), 72   ;;  %s1697_s19 = smov (!%p251_p3), 40  }
   0xc   : > { %s1916_s24 = smov (!%p283_p4, %s1675_s24), 1  ;;  %vm301_vm0 = vcmask 261120   ;;  %v340_v7 = vld [vmem:[%s1906_s3 + $0x18] sm:$0xff]  ;;  %v1685_v8 = vmov 0.0   ;;  %v339_v9 = vld [vmem:[%s1906_s3 + $0x10] sm:$0xff]  ;;  %vm1686_vm1 = vmmov 0  }
   0xd   : > { %s1479_s28 = sshll.u32 %s1916_s24, 3  ;;  %1533 = vmatprep.subr.mxu0 %v1685_v8  ;;  %1541 = vmatprep.mubr.msk.f32.mxu0 %vm1686_vm1, %v1685_v8  ;;  %v338_v10 = vld [vmem:[%s1906_s3 + $0x8] sm:$0xff]  ;;  %v337_v11 = vld [vmem:[%s1906_s3] sm:$0xff]  ;;  %vm421_vm4 = vcmask 785408   ;;  %vm432_vm5 = vcmask 64512  }
   0xe   : > { %s286_s8 = scalar_lea.vmem %s1903_s0, %s1479_s28  ;;  %1534 = vmatpush3.msra.mxu0 %v340_v7  ;;  %1544 = vmatprep.subr.mxu1 %v1685_v8  ;;  %v1481_v21 = vld [vmem:[%s1904_s1] ss:$0 sm:$0xff]  ;;  %v761_v53 = vld [vmem:[%s1908_s5 + $0x8] sm:$0xff] }
   0xf   : > { %v1764_v0 = vld [vmem:[%s286_s8] sm:$0xff]  ;;  %1535 = vmatprep.subr.mxu0 %v1685_v8  ;;  %1546 = vmatprep.mubr.msk.f32.mxu1 %vm1686_vm1, %v1685_v8  ;;  %s1690_s8 = smov 64  }
  0x10   : > { %v302_v1 = vsel %vm301_vm0, %v1764_v0, 0.0  ;;  %1536 = vmatpush3.msra.mxu0 %v339_v9  ;;  %v1482_v23 = vld [vmem:[%s1905_s2] ss:$0 sm:$0xff] }
  0x11   : > { %303 = vadd.xlane.f32.xlu0 %v302_v1  ;;  %1537 = vmatprep.subr.mxu0 %v1685_v8  ;;  %v1483_v26 = vld [vmem:[%s1907_s4] ss:$0 sm:$0xff] }
  0x12   : > { %1538 = vmatpush3.msra.mxu0 %v338_v10  ;;  %v595_v52 = vld [vmem:[%s1908_s5] sm:$0xff] }
  0x13   : > { %1539 = vmatprep.subr.mxu0 %v1685_v8 }
  0x14   : > { %1540 = vmatpush3.msra.mxu0 %v337_v11 }
  0x15   : > { %1554 = vmatprep.subr.mxu0 %v1685_v8 }
  0x9a   : > { %v304_v2 = vpop.xlane.xlu0 %303 }
  0x9b   : > { %v306_v3 = vmul.f32 0.03125, %v304_v2 }
  0x9d   : > { %v307_v4 = vsub.f32 %v1764_v0, %v306_v3 }
  0x9f   : > { %v308_v5 = vmul.f32 %v307_v4, %v307_v4 }
  0xa1   : > { %v309_v6 = vsel %vm301_vm0, %v308_v5, 0.0 }
  0xa2   : > { %310 = vadd.xlane.f32.xlu0 %v309_v6 }
 0x12b   : > { %v311_v12 = vpop.xlane.xlu0 %310 }
 0x12c   : > { %v312_v13 = vmul.f32 0.032258064, %v311_v12 }
 0x12e   : > { %1641 = vrsqrt.f32 %v312_v13  ;;  %vm315_vm2 = vcmp.eq.f32.partialorder %v312_v13, inf  ;;  %v318_v16 = vand.u32 2147483648, %v312_v13  ;;  %vm317_vm3 = vcmp.eq.f32.partialorder %v312_v13, 0.0 }
 0x13b   : > { %v1642_v14 = vpop.eup %1641 }
 0x13c   : > { %v314_v15 = vmul.f32 %v1642_v14, %v312_v13 }
 0x13e   : > { %v316_v17 = vsel %vm315_vm2, %v312_v13, %v314_v15 }
 0x13f   : > { %v319_v18 = vsel %vm317_vm3, %v318_v16, %v316_v17 }
 0x140   : > { %v320_v19 = vadd.f32 1e-06, %v319_v18 }
 0x142   : > { %1643 = vrcp.f32 %v320_v19 }
 0x14f   : > { %v1644_v20 = vpop.eup %1643 }
 0x150   : > { %v322_v22 = vmul.f32 %v1644_v20, %v307_v4  ;;  %v1073_v20 = vld [vmem:[%s1908_s5 + $0x10] sm:$0xff] }
 0x152   : > { %v329_v24 = vmul.f32 %v1481_v21, %v322_v22 }
 0x154   : > { %v336_v25 = vadd.f32 %v1482_v23, %v329_v24 }
 0x156   : > { %1542 = vmatmul.mubr.msk.f32.vlgmr.msra.gmra.mxu0 %vm301_vm0, %v336_v25 }
 0x157   : > { %1556 = vmatprep.mubr.msk.f32.mxu0 %vm1686_vm1, %v1685_v8 }
 0x216   : > { %v417_v27 = vpop.f32.mrf.mxu0 }
 0x217   : > { %v418_v28 = vadd.f32 %v1483_v26, %v417_v27 }
 0x218   : > { %v1543_v29 = vpop.f32.mrf.mxu0 }
 0x219   : > { %422 = vst.msk [vmem:[#allocation2] sm:$0xff] %vm421_vm4, %v418_v28 }
 0x220   : > { %v1804_v30 = vld [vmem:[#allocation2] sm:$0xff] }
 0x221   : > { %430 = vrot.lane.b32.xlu1 %v1804_v30, %s1687_s23  ;;  %596 = vrot.lane.b32.xlu0 %v1804_v30, %s1688_s29 }
 0x225   : > { %598 = vrot.lane.b32.xlu1 %v1804_v30, %s1689_s30 }
 0x293   : > { %v431_v31 = vpop.permute.xlu1 %430  ;;  %v597_v33 = vpop.permute.xlu0 %596 }
 0x294   : > { %1545 = vmatpush3.xpose.msk.msra.mxu1 %vm432_vm5, %v431_v31 }
 0x295   : > { %1549 = vmatprep.subr.mxu1 %v1685_v8 }
 0x297   : > { %v599_v32 = vpop.permute.xlu1 %598  ;;  %1547 = vmatmul.mubr.msk.f32.vlgmr.msra.gmra.mxu1 %vm432_vm5, %v1804_v30 }
 0x298   : > { %1555 = vmatpush3.xpose.msk.msra.mxu0 %vm432_vm5, %v599_v32  ;;  %1551 = vmatprep.mubr.msk.f32.mxu1 %vm1686_vm1, %v1685_v8 }
 0x299   : > { %1564 = vmatprep.subr.mxu0 %v1685_v8 }
 0x29b   : > { %1557 = vmatmul.mubr.msk.f32.vlgmr.msra.gmra.mxu0 %vm432_vm5, %v597_v33 }
 0x29c   : > { %1566 = vmatprep.mubr.msk.f32.mxu0 %vm1686_vm1, %v1685_v8  ;;  %1565 = vmatpush3.msra.mxu0 %v761_v53 }
 0x29d   : > { %1574 = vmatprep.subr.mxu0 %v1685_v8 }
 0x357   : > { %v504_v34 = vpop.f32.mrf.mxu1 }
 0x358   : > { %v508_v35 = vsel %vm432_vm5, %v504_v34, -inf }
 0x359   : > { %509 = vmax.xlane.f32.xlu1 %v508_v35  ;;  %v1548_v36 = vpop.f32.mrf.mxu1 }
 0x35b   : > { %v670_v37 = vpop.f32.mrf.mxu0 }
 0x35c   : > { %v674_v38 = vsel %vm432_vm5, %v670_v37, -inf }
 0x35d   : > { %675 = vmax.xlane.f32.xlu0 %v674_v38  ;;  %v1558_v39 = vpop.f32.mrf.mxu0 }
 0x36a   : > { %518 = vrot.lane.b32.xlu1 %v1804_v30, %s1690_s8 }
 0x373   : > { %684 = vrot.lane.b32.xlu0 %v1804_v30, %s1691_s9 }
 0x377   : > { %910 = vrot.lane.b32.xlu0 %v1804_v30, %s1692_s10  ;;  %s293_s10 = scalar_lea.vmem %s1910_s7, %s1479_s28 }
 0x37b   : > { %908 = vrot.lane.b32.xlu0 %v1804_v30, %s1693_s11 }
 0x3e2   : > { %v510_v40 = vpop.xlane.xlu1 %509 }
 0x3e3   : > { %v511_v41 = vsub.f32 %v504_v34, %v510_v40 }
 0x3e5   : > { %v512_v42 = vmul.f32 1.442695, %v511_v41 }
 0x3e6   : > { %v519_v43 = vpop.permute.xlu1 %518  ;;  %v676_v44 = vpop.xlane.xlu0 %675 }
 0x3e7   : > { %1645 = vpow2.f32 %v512_v42  ;;  %v677_v45 = vsub.f32 %v670_v37, %v676_v44  ;;  %1550 = vmatpush3.msra.mxu1 %v519_v43 }
 0x3e8   : > { %1559 = vmatprep.subr.mxu1 %v1685_v8 }
 0x3e9   : > { %v678_v46 = vmul.f32 1.442695, %v677_v45  ;;  %v1501_v45 = vld [vmem:[%s1909_s6] ss:$0 sm:$0xff] }
 0x3ea   : > { %v685_v48 = vpop.permute.xlu0 %684 }
 0x3eb   : > { %1647 = vpow2.f32 %v678_v46 }
 0x3ee   : > { %v911_v54 = vpop.permute.xlu0 %910 }
 0x3f2   : > { %v909_v55 = vpop.permute.xlu0 %908 }
 0x3f4   : > { %v1646_v47 = vpop.eup %1645 }
 0x3f5   : > { %1552 = vmatmul.mubr.msk.f32.vlgmr.msra.gmra.mxu1 %vm432_vm5, %v1646_v47  ;;  %v514_v49 = vsel %vm432_vm5, %v1646_v47, 0.0 }
 0x3f6   : > { %1560 = vmatpush3.msra.mxu1 %v685_v48  ;;  %515 = vadd.xlane.f32.xlu0 %v514_v49 }
 0x3f7   : > { %1561 = vmatprep.mubr.msk.f32.mxu1 %vm1686_vm1, %v1685_v8  ;;  %1569 = vmatprep.subr.mxu1 %v1685_v8 }
 0x3f8   : > { %v1648_v50 = vpop.eup %1647 }
 0x3f9   : > { %1562 = vmatmul.mubr.msk.f32.vlgmr.msra.gmra.mxu1 %vm432_vm5, %v1648_v50  ;;  %v680_v51 = vsel %vm432_vm5, %v1648_v50, 0.0 }
 0x3fa   : > { %681 = vadd.xlane.f32.xlu1 %v680_v51  ;;  %1571 = vmatprep.mubr.msk.f32.mxu1 %vm1686_vm1, %v1685_v8 }
 0x3fb   : > { %1570 = vmatpush3.msra.mxu1 %v595_v52 }
 0x3fc   : > { %1579 = vmatprep.subr.mxu1 %v1685_v8 }
 0x40b   : > { %996 = vrot.lane.b32.xlu1 %v1804_v30, %s1694_s12 }
 0x40c   : > { %1148 = vrot.lane.b32.xlu0 %v1804_v30, %s1695_s13 }
 0x47f   : > { %v516_v56 = vpop.xlane.xlu0 %515 }
 0x480   : > { %1649 = vrcp.f32 %v516_v56 }
 0x483   : > { %v682_v57 = vpop.xlane.xlu1 %681  ;;  %v1149_v19 = vpop.permute.xlu0 %1148 }
 0x484   : > { %1651 = vrcp.f32 %v682_v57 }
 0x487   : > { %v997_v62 = vpop.permute.xlu1 %996 }
 0x48d   : > { %v1650_v58 = vpop.eup %1649 }
 0x491   : > { %v1652_v63 = vpop.eup %1651 }
 0x4b5   : > { %v590_v59 = vpop.f32.mrf.mxu1 }
 0x4b6   : > { %v594_v60 = vmul.f32 %v1650_v58, %v590_v59 }
 0x4b7   : > { %v1553_v61 = vpop.f32.mrf.mxu1 }
 0x4b8   : > { %1572 = vmatmul.mubr.msk.f32.vlgmr.msra.gmra.mxu1 %vm432_vm5, %v594_v60 }
 0x4b9   : > { %1580 = vmatpush3.msra.mxu1 %v997_v62  ;;  %v756_v1 = vpop.f32.mrf.mxu1  ;;  %1581 = vmatprep.mubr.msk.f32.mxu1 %vm1686_vm1, %v1685_v8 }
 0x4ba   : > { %v760_v2 = vmul.f32 %v1652_v63, %v756_v1  ;;  %1589 = vmatprep.subr.mxu1 %v1685_v8 }
 0x4bb   : > { %v1563_v3 = vpop.f32.mrf.mxu1 }
 0x4bc   : > { %1567 = vmatmul.mubr.msk.f32.vlgmr.msra.gmra.mxu0 %vm432_vm5, %v760_v2 }
 0x4bd   : > { %1575 = vmatpush3.xpose.msk.msra.mxu0 %vm432_vm5, %v911_v54  ;;  %1576 = vmatprep.mubr.msk.f32.mxu0 %vm1686_vm1, %v1685_v8 }
 0x4be   : > { %1584 = vmatprep.subr.mxu0 %v1685_v8 }
 0x4c0   : > { %1577 = vmatmul.mubr.msk.f32.vlgmr.msra.gmra.mxu0 %vm432_vm5, %v909_v55 }
 0x4c1   : > { %1586 = vmatprep.mubr.msk.f32.mxu0 %vm1686_vm1, %v1685_v8  ;;  %1585 = vmatpush3.msra.mxu0 %v1073_v20 }
 0x4c2   : > { %1594 = vmatprep.subr.mxu0 %v1685_v8 }
 0x578   : > { %v904_v4 = vpop.f32.mrf.mxu1 }
 0x57a   : > { %v1573_v5 = vpop.f32.mrf.mxu1 }
 0x57c   : > { %v831_v6 = vpop.f32.mrf.mxu0 }
 0x57d   : > { %v905_v7 = vadd.f32 %v904_v4, %v831_v6 }
 0x57e   : > { %v1568_v9 = vpop.f32.mrf.mxu0 }
 0x580   : > { %v982_v10 = vpop.f32.mrf.mxu0 }
 0x581   : > { %v986_v11 = vsel %vm432_vm5, %v982_v10, -inf }
 0x582   : > { %987 = vmax.xlane.f32.xlu1 %v986_v11  ;;  %v1578_v12 = vpop.f32.mrf.mxu0 }
 0x593   : > { %1150 = vrot.lane.b32.xlu1 %v1804_v30, %s1696_s18 }
 0x60b   : > { %v988_v13 = vpop.xlane.xlu1 %987 }
 0x60c   : > { %v989_v14 = vsub.f32 %v982_v10, %v988_v13 }
 0x60e   : > { %v990_v15 = vmul.f32 1.442695, %v989_v14 }
 0x60f   : > { %v1151_v17 = vpop.permute.xlu1 %1150 }
 0x610   : > { %1653 = vpow2.f32 %v990_v15 }
 0x61d   : > { %v1654_v16 = vpop.eup %1653 }
 0x61e   : > { %1582 = vmatmul.mubr.msk.f32.vlgmr.msra.gmra.mxu1 %vm432_vm5, %v1654_v16  ;;  %v992_v18 = vsel %vm432_vm5, %v1654_v16, 0.0 }
 0x61f   : > { %1590 = vmatpush3.xpose.msk.msra.mxu1 %vm432_vm5, %v1151_v17  ;;  %993 = vadd.xlane.f32.xlu1 %v992_v18 }
 0x620   : > { %1591 = vmatprep.mubr.msk.f32.mxu1 %vm1686_vm1, %v1685_v8  ;;  %1599 = vmatprep.subr.mxu1 %v1685_v8 }
 0x622   : > { %1592 = vmatmul.mubr.msk.f32.vlgmr.msra.gmra.mxu1 %vm432_vm5, %v1149_v19 }
 0x623   : > { %1601 = vmatprep.mubr.msk.f32.mxu1 %vm1686_vm1, %v1685_v8 }
 0x630   : > { %1236 = vrot.lane.b32.xlu1 %v1804_v30, %s1697_s19 }
 0x6a8   : > { %v994_v21 = vpop.xlane.xlu1 %993 }
 0x6a9   : > { %1655 = vrcp.f32 %v994_v21 }
 0x6ac   : > { %v1237_v26 = vpop.permute.xlu1 %1236 }
 0x6b6   : > { %v1656_v22 = vpop.eup %1655 }
 0x6de   : > { %v1068_v23 = vpop.f32.mrf.mxu1 }
 0x6df   : > { %v1072_v24 = vmul.f32 %v1656_v22, %v1068_v23 }
 0x6e0   : > { %v1583_v25 = vpop.f32.mrf.mxu1 }
 0x6e1   : > { %1587 = vmatmul.mubr.msk.f32.vlgmr.msra.gmra.mxu0 %vm432_vm5, %v1072_v24 }
 0x6e2   : > { %1595 = vmatpush3.msra.mxu0 %v1237_v26  ;;  %v1222_v27 = vpop.f32.mrf.mxu1  ;;  %1596 = vmatprep.mubr.msk.f32.mxu0 %vm1686_vm1, %v1685_v8  ;;  %v1313_v8 = vld [vmem:[%s1908_s5 + $0x18] sm:$0xff] }
 0x6e3   : > { %v1226_v28 = vsel %vm432_vm5, %v1222_v27, -inf  ;;  %1600 = vmatpush3.msra.mxu1 %v1313_v8 }
 0x6e4   : > { %1227 = vmax.xlane.f32.xlu0 %v1226_v28  ;;  %v1593_v29 = vpop.f32.mrf.mxu1 }
 0x76d   : > { %v1228_v30 = vpop.xlane.xlu0 %1227 }
 0x76e   : > { %v1229_v31 = vsub.f32 %v1222_v27, %v1228_v30 }
 0x770   : > { %v1230_v32 = vmul.f32 1.442695, %v1229_v31 }
 0x772   : > { %1657 = vpow2.f32 %v1230_v32 }
 0x77f   : > { %v1658_v33 = vpop.eup %1657 }
 0x780   : > { %1597 = vmatmul.mubr.msk.f32.vlgmr.msra.gmra.mxu0 %vm432_vm5, %v1658_v33  ;;  %v1232_v34 = vsel %vm432_vm5, %v1658_v33, 0.0 }
 0x781   : > { %1233 = vadd.xlane.f32.xlu0 %v1232_v34 }
 0x7a1   : > { %v1143_v35 = vpop.f32.mrf.mxu0 }
 0x7a2   : > { %v1147_v36 = vadd.f32 %v1143_v35, %v905_v7 }
 0x7a3   : > { %v1588_v37 = vpop.f32.mrf.mxu0 }
 0x80a   : > { %v1234_v38 = vpop.xlane.xlu0 %1233 }
 0x80b   : > { %1659 = vrcp.f32 %v1234_v38 }
 0x818   : > { %v1660_v39 = vpop.eup %1659 }
 0x840   : > { %v1308_v40 = vpop.f32.mrf.mxu0 }
 0x841   : > { %v1312_v41 = vmul.f32 %v1660_v39, %v1308_v40 }
 0x842   : > { %v1598_v42 = vpop.f32.mrf.mxu0 }
 0x843   : > { %1602 = vmatmul.mubr.msk.f32.vlgmr.msra.gmra.mxu1 %vm432_vm5, %v1312_v41 }
 0x903   : > { %v1383_v43 = vpop.f32.mrf.mxu1 }
 0x904   : > { %v1387_v44 = vadd.f32 %v1383_v43, %v1147_v36 }
 0x905   : > { %v1603_v46 = vpop.f32.mrf.mxu1 }
 0x906   : > { %v1388_v47 = vadd.f32 %v1387_v44, %v1764_v0 }
 0x908   : > { %v1396_v48 = vadd.f32 %v1501_v45, %v1388_v47 }
 0x90a   : > { %1398 = vst.msk [vmem:[%s293_s10] sm:$0xff] %vm301_vm0, %v1396_v48 }
 0x90b PF: > { %s17_s26 = sadd.s32 1, %s1683_s26   ;;  %s1911_s24 = smov %s1679_s25 }
 0x90c   : > { %p14_p5 = scmp.ge.s32.totalorder %s17_s26, 4   ;;  %s1912_s25 = smov %s1914_s27 }
 0x90e   :  { %16 = sbr.rel (!%p14_p5) target bundleno = 2 (0x2), region = 84 }

</bundles_post_ra>
